<compile_context>
chip_gen: v6e
topology: v6e:2x2x1
jax: 0.10.0
libtpu: 0.0.40
codegen_flags: <defaults>
</compile_context>

<pallas_src>
import functools

import numpy as np
import jax
import jax.numpy as jnp
from jax.experimental import pallas as pl
from jax.experimental.pallas import tpu as pltpu


def _ceil_to(x, m):
    return ((x + m - 1) // m) * m


# ----------------------------------------------------------------------------
# Kernel: fused chain   h <- relu?(h @ W_j + b_j)   over one batch tile.
# ----------------------------------------------------------------------------
def _fused_dense_chain_kernel(*refs, n_layers, relu_flags):
    """refs = (x, W0, b0, ..., W_{L-1}, b_{L-1}, out).

    Every layer is a single MXU matmul (bf16 operands, f32 accumulation) with
    M = batch tile and K/N padded to multiples of 128; bias + ReLU epilogues
    run once per layer in f32 (v5e-safe).  Activations never leave VMEM/vregs.
    """
    x_ref = refs[0]
    o_ref = refs[1 + 2 * n_layers]

    h = x_ref[...].astype(jnp.bfloat16)            # (TB, K0)
    for j in range(n_layers):
        w_ref = refs[1 + 2 * j]                    # (K_j, N_j) bf16
        b_ref = refs[2 + 2 * j]                    # (1,   N_j) f32
        acc = jnp.dot(h, w_ref[...], preferred_element_type=jnp.float32)
        acc = acc + b_ref[...]                     # broadcast bias, f32
        if relu_flags[j]:
            acc = jnp.maximum(acc, 0.0)
        h = acc.astype(jnp.bfloat16) if j < n_layers - 1 else acc
    o_ref[...] = h.astype(o_ref.dtype)


# ----------------------------------------------------------------------------
# Parameters: random init in PyTorch layouts, then a one-time TPU repack.
# ----------------------------------------------------------------------------
def init_torch_params(key, architecture, n_states, n_actions):
    """Random parameters in PyTorch nn.Conv2d / nn.Linear layouts."""
    params = {"cnn": [], "mlp": []}
    if "cnn_channels" in architecture:
        chans = architecture["cnn_channels"]
        for cin, cout, k in zip(chans[:-1], chans[1:], architecture["cnn_kernels"]):
            key, k1, k2 = jax.random.split(key, 3)
            params["cnn"].append(
                (0.1 * jax.random.normal(k1, (cout, cin, k, k), jnp.float32),
                 0.1 * jax.random.normal(k2, (cout,), jnp.float32)))
        mlp_in = architecture["cnn_output_dim"]
    else:
        mlp_in = n_states
    dims = [mlp_in] + architecture["mlp_layers"] + [n_actions]
    for din, dout in zip(dims[:-1], dims[1:]):
        key, k1, k2 = jax.random.split(key, 3)
        params["mlp"].append(
            (0.1 * jax.random.normal(k1, (dout, din), jnp.float32),
             0.1 * jax.random.normal(k2, (dout,), jnp.float32)))
    return params


def _conv_layer_as_dense(conv_w, conv_b, h, w, stride):
    """Fold a 'valid' stride-s nn.Conv2d (OIHW weight) into the dense matrix
    mapping the NCHW-flattened input to the NCHW-flattened (== torch.flatten)
    output.  One-time pack-side numpy work; sizes here are tiny (<= 1024x512).
    """
    cout, cin, kh, kw = conv_w.shape
    oh = (h - kh) // stride + 1
    ow = (w - kw) // stride + 1
    dense = np.zeros((cin, h, w, cout, oh, ow), np.float32)
    for dh in range(kh):
        for dw in range(kw):
            tap = conv_w[:, :, dh, dw].T                    # (cin, cout)
            for oi in range(oh):
                for oj in range(ow):
                    dense[:, oi * stride + dh, oj * stride + dw, :, oi, oj] = tap
    dense = dense.reshape(cin * h * w, cout * oh * ow)
    bias = np.repeat(conv_b, oh * ow)                       # b[c] per (c,oh,ow)
    return dense, bias, (oh, ow)


def pack_params(torch_params, architecture, input_hw=None):
    """One-time layout work:
      * each conv layer folded into its dense NCHW-flat linear map (so the
        torch.flatten order is already baked in — no junction reorder),
      * every output feature dim zero-padded to a multiple of 128 lanes and
        every K dim chained to the previous padded N (padded rows/cols are
        zero, so results are exact),
      * weights cast to bf16 once (MXU operands); biases stay f32.
    """
    # TODO(synk): only 'relu' is wired up for cnn_activation / mlp_activation.
    raw = []  # (W: (K, N) f32, b: (N,) f32, relu_after: bool)
    if "cnn_channels" in architecture:
        assert architecture.get("cnn_activation", "relu") == "relu"
        h, w = input_hw
        for (cw, cb), s in zip(torch_params["cnn"], architecture["cnn_strides"]):
            dense, bias, (h, w) = _conv_layer_as_dense(
                np.asarray(cw), np.asarray(cb), h, w, s)
            raw.append((dense, bias, True))
        c_last = architecture["cnn_channels"][-1]
        assert architecture["cnn_output_dim"] == c_last * h * w
    assert architecture.get("mlp_activation", "relu") == "relu"
    n_mlp = len(torch_params["mlp"])
    for j, (lw, lb) in enumerate(torch_params["mlp"]):
        raw.append((np.asarray(lw).T, np.asarray(lb), j < n_mlp - 1))

    layers = []
    for j, (w_, b_, relu) in enumerate(raw):
        k, nout = w_.shape
        n_padded = _ceil_to(nout, 128)
        k_padded = k if j == 0 else layers[j - 1][0].shape[1]
        wp = np.zeros((k_padded, n_padded), np.float32)
        wp[:k, :nout] = w_
        bp = np.zeros((1, n_padded), np.float32)
        bp[0, :nout] = b_
        layers.append((jnp.asarray(wp, dtype=jnp.bfloat16),
                       jnp.asarray(bp, dtype=jnp.float32),
                       bool(relu)))
    return {"layers": layers,
            "n_actions": torch_params["mlp"][-1][0].shape[0]}


# ----------------------------------------------------------------------------
# Forward pass: ONE fused pallas_call over batch tiles.
# ----------------------------------------------------------------------------
def _choose_batch_tile(n):
    if n <= 16:
        # One grid step; block dims equal the full array dims, so the (8,128)
        # rule is satisfied even for odd / tiny n.
        return n, n
    # Fat M per step, but keep >= 2 grid steps so the "parallel" batch axis can
    # be sharded across v7x's two TensorCores.
    tb = max(8, min(128, ((n // 2) // 8) * 8))
    return tb, _ceil_to(n, tb)


def discrete_qnet_forward(packed, states):
    """states: (N, C, H, W) f32 (PyTorch NCHW) for the CNN variant, or
    (N, n_states) f32 for the pure-MLP variant."""
    n = states.shape[0]
    # torch.flatten(start_dim=1) order; a free reshape of a contiguous array —
    # no transpose, no channel padding, no extra HBM pass.
    x = states.reshape(n, -1).astype(jnp.float32)
    layers = packed["layers"]
    din = layers[0][0].shape[0]
    assert x.shape[1] == din, (x.shape, din)

    tb, n_pad = _choose_batch_tile(n)
    if n_pad != n:
        x = jnp.pad(x, ((0, n_pad - n), (0, 0)))

    out_pad = layers[-1][0].shape[1]
    flat_in = [x]
    for wp, bp, _ in layers:
        flat_in += [wp, bp]

    in_specs = [pl.BlockSpec((tb, din), lambda i: (i, 0))]
    # Weights/biases are small (~1.4 MiB bf16 total): constant index maps keep
    # them VMEM-resident across all batch tiles.
    in_specs += [pl.BlockSpec(a.shape, lambda i: (0, 0)) for a in flat_in[1:]]
    out_specs = pl.BlockSpec((tb, out_pad), lambda i: (i, 0))

    kernel = functools.partial(
        _fused_dense_chain_kernel,
        n_layers=len(layers),
        relu_flags=tuple(r for _, _, r in layers),
    )
    out = pl.pallas_call(
        kernel,
        out_shape=jax.ShapeDtypeStruct((n_pad, out_pad), jnp.float32),
        grid_spec=pltpu.PrefetchScalarGridSpec(
            num_scalar_prefetch=0,
            grid=(n_pad // tb,),
            in_specs=in_specs,
            out_specs=out_specs,
        ),
        compiler_params=pltpu.CompilerParams(
            dimension_semantics=("parallel",),
            vmem_limit_bytes=32 * 1024 * 1024,
        ),
    )(*flat_in)
    return out[:n, :packed["n_actions"]]


# ----------------------------------------------------------------------------
# Pure-JAX reference (mirrors the PyTorch module) for validation.
# ----------------------------------------------------------------------------
def reference_forward(torch_params, architecture, states):
    x = states
    if "cnn_channels" in architecture:
        for (cw, cb), s in zip(torch_params["cnn"], architecture["cnn_strides"]):
            x = jax.lax.conv_general_dilated(
                x, cw, window_strides=(s, s), padding="VALID",
                dimension_numbers=("NCHW", "OIHW", "NCHW"))
            x = jnp.maximum(x + cb[None, :, None, None], 0.0)
        x = x.reshape(x.shape[0], -1)          # torch.flatten(start_dim=1)
    n_mlp = len(torch_params["mlp"])
    for j, (lw, lb) in enumerate(torch_params["mlp"]):
        x = x @ lw.T + lb
        if j < n_mlp - 1:
            x = jnp.maximum(x, 0.0)
    return x


if __name__ == "__main__":
    # input (N=2, C=4, 16, 16) -> conv(4->8,k3,s2) -> 8x7x7
    #                          -> conv(8->16,k3,s2) -> 16x3x3 -> flatten 144
    # MLP [144, 32, n_actions=6]
    architecture = {
        "cnn_channels": [4, 8, 16],
        "cnn_kernels": [3, 3],
        "cnn_strides": [2, 2],
        "cnn_activation": "relu",
        "cnn_output_dim": 16 * 3 * 3,
        "mlp_layers": [32],
        "mlp_activation": "relu",
    }
    n_actions = 6
    batch, in_c, in_hw = 2, 4, 16

    key = jax.random.PRNGKey(0)
    key, pkey, xkey = jax.random.split(key, 3)
    torch_params = init_torch_params(pkey, architecture,
                                     n_states=in_c * in_hw * in_hw,
                                     n_actions=n_actions)
    packed = pack_params(torch_params, architecture, input_hw=(in_hw, in_hw))
    states = jax.random.normal(xkey, (batch, in_c, in_hw, in_hw), jnp.float32)

    q_values = discrete_qnet_forward(packed, states)
    jax.block_until_ready(q_values)
    assert q_values.shape == (batch, n_actions)

    q_ref = reference_forward(torch_params, architecture, states)
    # bf16 MXU operands with f32 accumulation -> small numeric drift vs f32 ref.
    assert jnp.allclose(q_values, q_ref, atol=5e-2, rtol=5e-2), (
        float(jnp.max(jnp.abs(q_values - q_ref))))
    print("KERNEL_OK")
</pallas_src>

<mosaic_0001>
module attributes {stable_mosaic.version = 11 : i64} {
  func.func @_fused_dense_chain_kernel(%arg0: i32, %arg1: memref<2x1024xf32, #tpu.memory_space<vmem>>, %arg2: memref<1024x512xbf16, #tpu.memory_space<vmem>>, %arg3: memref<1x512xf32, #tpu.memory_space<vmem>>, %arg4: memref<512x256xbf16, #tpu.memory_space<vmem>>, %arg5: memref<1x256xf32, #tpu.memory_space<vmem>>, %arg6: memref<256x128xbf16, #tpu.memory_space<vmem>>, %arg7: memref<1x128xf32, #tpu.memory_space<vmem>>, %arg8: memref<128x128xbf16, #tpu.memory_space<vmem>>, %arg9: memref<1x128xf32, #tpu.memory_space<vmem>>, %arg10: memref<2x128xf32, #tpu.memory_space<vmem>>) attributes {dimension_semantics = [#tpu.dimension_semantics<parallel>], iteration_bounds = array<i64: 1>, scalar_prefetch = 0 : i64, scratch_operands = 0 : i64, tpu.core_type = #tpu.core_type<tc>, window_params = [{transform_indices = @transform_0, window_bounds = array<i64: 2, 1024>}, {pipeline_mode = #tpu.pipeline_mode<synchronous>, transform_indices = @transform_1, window_bounds = array<i64: 1024, 512>}, {pipeline_mode = #tpu.pipeline_mode<synchronous>, transform_indices = @transform_2, window_bounds = array<i64: 1, 512>}, {pipeline_mode = #tpu.pipeline_mode<synchronous>, transform_indices = @transform_3, window_bounds = array<i64: 512, 256>}, {pipeline_mode = #tpu.pipeline_mode<synchronous>, transform_indices = @transform_4, window_bounds = array<i64: 1, 256>}, {pipeline_mode = #tpu.pipeline_mode<synchronous>, transform_indices = @transform_5, window_bounds = array<i64: 256, 128>}, {pipeline_mode = #tpu.pipeline_mode<synchronous>, transform_indices = @transform_6, window_bounds = array<i64: 1, 128>}, {pipeline_mode = #tpu.pipeline_mode<synchronous>, transform_indices = @transform_7, window_bounds = array<i64: 128, 128>}, {pipeline_mode = #tpu.pipeline_mode<synchronous>, transform_indices = @transform_8, window_bounds = array<i64: 1, 128>}, {transform_indices = @transform_9, window_bounds = array<i64: 2, 128>}]} {
    %c0 = arith.constant 0 : index
    %c0_0 = arith.constant 0 : index
    %0 = vector.load %arg1[%c0, %c0_0] : memref<2x1024xf32, #tpu.memory_space<vmem>>, vector<2x1024xf32>
    %1 = arith.truncf %0 : vector<2x1024xf32> to vector<2x1024xbf16>
    %c0_1 = arith.constant 0 : index
    %c0_2 = arith.constant 0 : index
    %2 = vector.load %arg2[%c0_1, %c0_2] : memref<1024x512xbf16, #tpu.memory_space<vmem>>, vector<1024x512xbf16>
    %cst = arith.constant dense<0.000000e+00> : vector<2x512xf32>
    %3 = tpu.matmul %1, %2, %cst {dimension_numbers = #tpu.dot_dimension_numbers<[1], [0], [0], [1], [0, 0, 1, 1], [], []>} : vector<2x1024xbf16>, vector<1024x512xbf16>, vector<2x512xf32> -> vector<2x512xf32>
    %c0_3 = arith.constant 0 : index
    %c0_4 = arith.constant 0 : index
    %4 = vector.load %arg3[%c0_3, %c0_4] : memref<1x512xf32, #tpu.memory_space<vmem>>, vector<1x512xf32>
    %5 = vector.broadcast %4 : vector<1x512xf32> to vector<2x512xf32>
    %6 = arith.addf %3, %5 : vector<2x512xf32>
    %cst_5 = arith.constant 0.000000e+00 : f32
    %7 = vector.broadcast %cst_5 : f32 to vector<2x512xf32>
    %8 = arith.maximumf %6, %7 : vector<2x512xf32>
    %9 = arith.truncf %8 : vector<2x512xf32> to vector<2x512xbf16>
    %c0_6 = arith.constant 0 : index
    %c0_7 = arith.constant 0 : index
    %10 = vector.load %arg4[%c0_6, %c0_7] : memref<512x256xbf16, #tpu.memory_space<vmem>>, vector<512x256xbf16>
    %cst_8 = arith.constant dense<0.000000e+00> : vector<2x256xf32>
    %11 = tpu.matmul %9, %10, %cst_8 {dimension_numbers = #tpu.dot_dimension_numbers<[1], [0], [0], [1], [0, 0, 1, 1], [], []>} : vector<2x512xbf16>, vector<512x256xbf16>, vector<2x256xf32> -> vector<2x256xf32>
    %c0_9 = arith.constant 0 : index
    %c0_10 = arith.constant 0 : index
    %12 = vector.load %arg5[%c0_9, %c0_10] : memref<1x256xf32, #tpu.memory_space<vmem>>, vector<1x256xf32>
    %13 = vector.broadcast %12 : vector<1x256xf32> to vector<2x256xf32>
    %14 = arith.addf %11, %13 : vector<2x256xf32>
    %cst_11 = arith.constant 0.000000e+00 : f32
    %15 = vector.broadcast %cst_11 : f32 to vector<2x256xf32>
    %16 = arith.maximumf %14, %15 : vector<2x256xf32>
    %17 = arith.truncf %16 : vector<2x256xf32> to vector<2x256xbf16>
    %c0_12 = arith.constant 0 : index
    %c0_13 = arith.constant 0 : index
    %18 = vector.load %arg6[%c0_12, %c0_13] : memref<256x128xbf16, #tpu.memory_space<vmem>>, vector<256x128xbf16>
    %cst_14 = arith.constant dense<0.000000e+00> : vector<2x128xf32>
    %19 = tpu.matmul %17, %18, %cst_14 {dimension_numbers = #tpu.dot_dimension_numbers<[1], [0], [0], [1], [0, 0, 1, 1], [], []>} : vector<2x256xbf16>, vector<256x128xbf16>, vector<2x128xf32> -> vector<2x128xf32>
    %c0_15 = arith.constant 0 : index
    %c0_16 = arith.constant 0 : index
    %20 = vector.load %arg7[%c0_15, %c0_16] : memref<1x128xf32, #tpu.memory_space<vmem>>, vector<1x128xf32>
    %21 = vector.broadcast %20 : vector<1x128xf32> to vector<2x128xf32>
    %22 = arith.addf %19, %21 : vector<2x128xf32>
    %cst_17 = arith.constant 0.000000e+00 : f32
    %23 = vector.broadcast %cst_17 : f32 to vector<2x128xf32>
    %24 = arith.maximumf %22, %23 : vector<2x128xf32>
    %25 = arith.truncf %24 : vector<2x128xf32> to vector<2x128xbf16>
    %c0_18 = arith.constant 0 : index
    %c0_19 = arith.constant 0 : index
    %26 = vector.load %arg8[%c0_18, %c0_19] : memref<128x128xbf16, #tpu.memory_space<vmem>>, vector<128x128xbf16>
    %cst_20 = arith.constant dense<0.000000e+00> : vector<2x128xf32>
    %27 = tpu.matmul %25, %26, %cst_20 {dimension_numbers = #tpu.dot_dimension_numbers<[1], [0], [0], [1], [0, 0, 1, 1], [], []>} : vector<2x128xbf16>, vector<128x128xbf16>, vector<2x128xf32> -> vector<2x128xf32>
    %c0_21 = arith.constant 0 : index
    %c0_22 = arith.constant 0 : index
    %28 = vector.load %arg9[%c0_21, %c0_22] : memref<1x128xf32, #tpu.memory_space<vmem>>, vector<1x128xf32>
    %29 = vector.broadcast %28 : vector<1x128xf32> to vector<2x128xf32>
    %30 = arith.addf %27, %29 : vector<2x128xf32>
    %c0_23 = arith.constant 0 : index
    %c0_24 = arith.constant 0 : index
    %31 = vector.load %arg10[%c0_23, %c0_24] : memref<2x128xf32, #tpu.memory_space<vmem>>, vector<2x128xf32>
    tpu.vector_store %arg10[%c0_23, %c0_24], %30 {strides = array<i32>} : memref<2x128xf32, #tpu.memory_space<vmem>>, vector<2x128xf32>,
    return
  }
  func.func @transform_0(%arg0: i32) -> (i32, i32) {
    %c0_i32 = arith.constant 0 : i32
    %c0_i32_0 = arith.constant 0 : i32
    return %arg0, %c0_i32 : i32, i32
  }
  func.func @transform_1(%arg0: i32) -> (i32, i32) {
    %c0_i32 = arith.constant 0 : i32
    %c0_i32_0 = arith.constant 0 : i32
    %c0_i32_1 = arith.constant 0 : i32
    return %c0_i32, %c0_i32_0 : i32, i32
  }
  func.func @transform_2(%arg0: i32) -> (i32, i32) {
    %c0_i32 = arith.constant 0 : i32
    %c0_i32_0 = arith.constant 0 : i32
    %c0_i32_1 = arith.constant 0 : i32
    return %c0_i32, %c0_i32_0 : i32, i32
  }
  func.func @transform_3(%arg0: i32) -> (i32, i32) {
    %c0_i32 = arith.constant 0 : i32
    %c0_i32_0 = arith.constant 0 : i32
    %c0_i32_1 = arith.constant 0 : i32
    return %c0_i32, %c0_i32_0 : i32, i32
  }
  func.func @transform_4(%arg0: i32) -> (i32, i32) {
    %c0_i32 = arith.constant 0 : i32
    %c0_i32_0 = arith.constant 0 : i32
    %c0_i32_1 = arith.constant 0 : i32
    return %c0_i32, %c0_i32_0 : i32, i32
  }
  func.func @transform_5(%arg0: i32) -> (i32, i32) {
    %c0_i32 = arith.constant 0 : i32
    %c0_i32_0 = arith.constant 0 : i32
    %c0_i32_1 = arith.constant 0 : i32
    return %c0_i32, %c0_i32_0 : i32, i32
  }
  func.func @transform_6(%arg0: i32) -> (i32, i32) {
    %c0_i32 = arith.constant 0 : i32
    %c0_i32_0 = arith.constant 0 : i32
    %c0_i32_1 = arith.constant 0 : i32
    return %c0_i32, %c0_i32_0 : i32, i32
  }
  func.func @transform_7(%arg0: i32) -> (i32, i32) {
    %c0_i32 = arith.constant 0 : i32
    %c0_i32_0 = arith.constant 0 : i32
    %c0_i32_1 = arith.constant 0 : i32
    return %c0_i32, %c0_i32_0 : i32, i32
  }
  func.func @transform_8(%arg0: i32) -> (i32, i32) {
    %c0_i32 = arith.constant 0 : i32
    %c0_i32_0 = arith.constant 0 : i32
    %c0_i32_1 = arith.constant 0 : i32
    return %c0_i32, %c0_i32_0 : i32, i32
  }
  func.func @transform_9(%arg0: i32) -> (i32, i32) {
    %c0_i32 = arith.constant 0 : i32
    %c0_i32_0 = arith.constant 0 : i32
    return %arg0, %c0_i32 : i32, i32
  }
}

</mosaic_0001>

<bundles_post_ra>
// kernel: tpu_custom_call.1
= control target key start
LH: loop header
LB: loop body
LE: loop exit
PB: predicated region body
PF: predicated region fallthrough
CT: control target
= control target key end

     0   :  { %14 = vsyncpa [#allocation3], 0  ;;  %s4097_s0 = inlined_call_operand.hbm [shape: f32[2,1024], index: 0, kind: input, shape index: {}]   ;;  %s4098_s1 = inlined_call_operand.hbm [shape: bf16[1024,512], index: 1, kind: input, shape index: {}]   ;;  %s4099_s2 = inlined_call_operand.hbm [shape: f32[1,512], index: 2, kind: input, shape index: {}]   ;;  %s4100_s3 = inlined_call_operand.hbm [shape: bf16[512,256], index: 3, kind: input, shape index: {}]   ;;  %s4101_s4 = inlined_call_operand.vmem [shape: f32[1,256], index: 4, kind: input, shape index: {}]   ;;  %s4102_s5 = inlined_call_operand.hbm [shape: bf16[256,128], index: 5, kind: input, shape index: {}]   ;;  %s4103_s6 = inlined_call_operand.vmem [shape: f32[1,128], index: 6, kind: input, shape index: {}]   ;;  %s4104_s7 = inlined_call_operand.hbm [shape: bf16[128,128], index: 7, kind: input, shape index: {}]   ;;  %s4105_s8 = inlined_call_operand.vmem [shape: f32[1,128], index: 8, kind: input, shape index: {}]   ;;  %s4106_s9 = inlined_call_operand.hbm [shape: f32[2,128], index: 9, kind: output, shape index: {}]  }
   0x1   :  { %15 = vsyncpa [#allocation6], 0 }
   0x2   :  { %16 = vsyncpa [#allocation9], 0 }
   0x3   :  { %17 = vsyncpa [#allocation12], 0 }
   0x4   :  { %18 = vsyncpa [#allocation4], 0  ;;  %s3918_s30 = smov [#allocation5]  }
   0x5   :  { %s34_s10 = sshll.u32 %s3918_s30, 4  ;;  %s35_s10 = int_to_ptr.vmem [resolvable:$true] %s34_s10 }
   0x6   :  { %s3776_s11 = scalar_lea.vmem %s35_s10, 32768  ;;  %p3781_p1 = scmp.lt.s32.totalorder %s35_s10, %s35_s10 }
   0x7   :  { %p3777_p0 = scmp.ne.s32.totalorder %s35_s10, %s3776_s11  ;;  %p3782_p2 = scmp.lt.s32.totalorder %s3776_s11, %s3776_s11 }
   0x9   :  { %p3783_p3 = por %p3782_p2, %p3781_p1 }
   0xb   :  { %p3784_p4 = pnand %p3783_p3, %p3777_p0 }
   0xd   :  { %3787 = shalt.err (!%p3784_p4)
}
   0xe   :  { %s3919_s12 = smov 256   ;;  %s3920_s13 = smov 16  }
   0xf   :  { %40 = dma.hbm_to_vmem [thread:$0]  %s4098_s1, 32768, %s35_s10, [#allocation6], %s3919_s12, %s3919_s12, %s3920_s13  }
  0x10   :  { %s3921_s16 = smov [#allocation8]  }
  0x11   :  { %s56_s17 = sshll.u32 %s3921_s16, 4  ;;  %s57_s17 = int_to_ptr.vmem [resolvable:$true] %s56_s17 }
  0x12   :  { %s3796_s18 = scalar_lea.vmem %s57_s17, 8192  ;;  %p3801_p6 = scmp.lt.s32.totalorder %s57_s17, %s57_s17 }
  0x13   :  { %p3797_p5 = scmp.ne.s32.totalorder %s57_s17, %s3796_s18  ;;  %p3802_p7 = scmp.lt.s32.totalorder %s3796_s18, %s3796_s18 }
  0x15   :  { %p3803_p8 = por %p3802_p7, %p3801_p6 }
  0x17   :  { %p3804_p9 = pnand %p3803_p8, %p3797_p5 }
  0x19   :  { %3807 = shalt.err (!%p3804_p9)
}
  0x1a   :  { %s3922_s19 = smov 128   ;;  %s3923_s20 = smov 8  }
  0x1b   :  { %62 = dma.hbm_to_vmem [thread:$0]  %s4100_s3, 8192, %s57_s17, [#allocation9], %s3922_s19, %s3922_s19, %s3923_s20  }
  0x1c   :  { %s3924_s23 = smov [#allocation2]   ;;  %s3925_s25 = smov [#allocation7]  }
  0x1d   :  { %s25_s24 = sshll.u32 %s3924_s23, 4  ;;  %s47_s1 = sshll.u32 %s3925_s25, 4  ;;  %s26_s24 = int_to_ptr.vmem [resolvable:$true] %s25_s24  ;;  %s48_s1 = int_to_ptr.vmem [resolvable:$true] %s47_s1 }
  0x1e   :  { %s3816_s26 = scalar_lea.vmem %s26_s24, 256  ;;  %p3821_p11 = scmp.lt.s32.totalorder %s26_s24, %s26_s24 }
  0x1f   :  { %p3817_p10 = scmp.ne.s32.totalorder %s26_s24, %s3816_s26  ;;  %p3822_p12 = scmp.lt.s32.totalorder %s3816_s26, %s3816_s26 }
  0x21   :  { %p3823_p13 = por %p3822_p12, %p3821_p11 }
  0x23   :  { %p3824_p0 = pnand %p3823_p13, %p3817_p10 }
  0x25   :  { %3827 = shalt.err (!%p3824_p0)
}
  0x26   :  { %28 = dma.hbm_to_vmem [thread:$0]  %s4097_s0, 256, %s26_s24, [#allocation3]  }
  0x27   :  { %s3836_s29 = scalar_lea.vmem %s48_s1, 64  ;;  %p3841_p2 = scmp.lt.s32.totalorder %s48_s1, %s48_s1 }
  0x28   :  { %p3837_p1 = scmp.ne.s32.totalorder %s48_s1, %s3836_s29  ;;  %p3842_p3 = scmp.lt.s32.totalorder %s3836_s29, %s3836_s29 }
  0x2a   :  { %p3843_p4 = por %p3842_p3, %p3841_p2 }
  0x2c   :  { %p3844_p5 = pnand %p3843_p4, %p3837_p1 }
  0x2e   :  { %3847 = shalt.err (!%p3844_p5)
}
  0x2f   :  { %50 = dma.hbm_to_vmem [thread:$0]  %s4099_s2, 64, %s48_s1, [#allocation6]  }
  0x30   :  { %s3926_s10 = smov [#allocation10]  }
  0x31   :  { %s70_s11 = sshll.u32 %s3926_s10, 4  ;;  %s71_s11 = int_to_ptr.vmem [resolvable:$true] %s70_s11 }
  0x32   :  { %s3856_s12 = scalar_lea.vmem %s71_s11, 2048  ;;  %p3861_p7 = scmp.lt.s32.totalorder %s71_s11, %s71_s11 }
  0x33   :  { %p3857_p6 = scmp.ne.s32.totalorder %s71_s11, %s3856_s12  ;;  %p3862_p8 = scmp.lt.s32.totalorder %s3856_s12, %s3856_s12 }
  0x35   :  { %p3863_p9 = por %p3862_p8, %p3861_p7 }
  0x37   :  { %p3864_p10 = pnand %p3863_p9, %p3857_p6 }
  0x39   :  { %3867 = shalt.err (!%p3864_p10)
}
  0x3a   :  { %s3927_s0 = smov 64   ;;  %s3928_s13 = smov 4  }
  0x3b   :  { %76 = dma.hbm_to_vmem [thread:$0]  %s4102_s5, 2048, %s71_s11, [#allocation9], %s3927_s0, %s3927_s0, %s3928_s13  }
  0x3c   :  { %s3929_s16 = smov [#allocation11]  }
  0x3d   :  { %s84_s17 = sshll.u32 %s3929_s16, 4  ;;  %s85_s17 = int_to_ptr.vmem [resolvable:$true] %s84_s17 }
  0x3e   :  { %s3876_s2 = scalar_lea.vmem %s85_s17, 1024  ;;  %p3881_p12 = scmp.lt.s32.totalorder %s85_s17, %s85_s17 }
  0x3f   :  { %p3877_p11 = scmp.ne.s32.totalorder %s85_s17, %s3876_s2  ;;  %p3882_p13 = scmp.lt.s32.totalorder %s3876_s2, %s3876_s2 }
  0x41   :  { %p3883_p0 = por %p3882_p13, %p3881_p12 }
  0x43   :  { %p3884_p1 = pnand %p3883_p0, %p3877_p11 }
  0x45   :  { %3887 = shalt.err (!%p3884_p1)
}
  0x46   :  { %90 = dma.hbm_to_vmem [thread:$0]  %s4104_s7, 1024, %s85_s17, [#allocation12], %s3927_s0, %s3927_s0, %s3928_s13  }
  0x47   :  { %3908 = dma.done.wait [#allocation3], 256  }
  0x48   :  { %3909 = vsyncadd [#allocation3], 4294967040 }
  0x49   :  { %3910 = dma.done.wait [#allocation6], 32832  }
  0x4a   :  { %3911 = vsyncadd [#allocation6], 4294934464 }
  0x4b   :  { %3912 = dma.done.wait [#allocation9], 10240  }
  0x4c   :  { %3913 = vsyncadd [#allocation9], 4294957056 }
  0x4d   :  { %3914 = dma.done.wait [#allocation12], 1024  }
  0x4e   :  { %3915 = vsyncadd [#allocation12], 4294966272  ;;  %v3262_v0 = vld [vmem:[#allocation5 + $0xe4] ss:$16 sps:$4 sm:$0xff]   ;;  %v3266_v2 = vld [vmem:[#allocation5 + $0xe0] ss:$16 sps:$4 sm:$0xff]   ;;  %v120_v38 = vlaneseq }
  0x4f   :  { %v3264_v1 = vld [vmem:[#allocation5 + $0x2e4] ss:$16 sps:$4 sm:$0xff]   ;;  %1724 = vmatprep.subr.bf16.mxu0 %v3262_v0  ;;  %v3267_v3 = vld [vmem:[#allocation5 + $0x2e0] ss:$16 sps:$4 sm:$0xff]   ;;  %v3930_v36 = vmov 1983009808  }
  0x50   :  { %1765 = vmatprep.subr.bf16.mxu1 %v3264_v1  ;;  %v3268_v4 = vld [vmem:[#allocation5 + $0xc4] ss:$16 sps:$4 sm:$0xff]   ;;  %1725 = vmatpush1.bf16.msra.mxu0 %v3266_v2  ;;  %v3272_v6 = vld [vmem:[#allocation5 + $0xc0] ss:$16 sps:$4 sm:$0xff]   ;;  %v118_v37 = vunpack.c.l.s4 %v3930_v36  ;;  %v4002_v43 = vshrl.u32 %v120_v38, 7  ;;  %vm3932_vm0 = vmmov 0  }
  0x51   :  { %1766 = vmatpush1.bf16.msra.mxu1 %v3267_v3  ;;  %v3270_v5 = vld [vmem:[#allocation5 + $0x2c4] ss:$16 sps:$4 sm:$0xff]   ;;  %1726 = vmatprep.subr.bf16.mxu0 %v3268_v4  ;;  %v3273_v7 = vld [vmem:[#allocation5 + $0x2c0] ss:$16 sps:$4 sm:$0xff]   ;;  %s3933_s23 = smov [#allocation13]  }
  0x52   :  { %1767 = vmatprep.subr.bf16.mxu1 %v3270_v5  ;;  %v3274_v8 = vld [vmem:[#allocation5 + $0xa4] ss:$16 sps:$4 sm:$0xff]   ;;  %v3278_v10 = vld [vmem:[#allocation5 + $0xa0] ss:$16 sps:$4 sm:$0xff]   ;;  %v119_v42 = vunpack.c.0.s8 %v118_v37  ;;  %s2837_s24 = sshll.u32 %s3933_s23, 4  ;;  %s2838_s24 = int_to_ptr.vmem [resolvable:$true] %s2837_s24 }
  0x53   :  { %v3276_v9 = vld [vmem:[#allocation5 + $0x2a4] ss:$16 sps:$4 sm:$0xff]   ;;  %v3279_v11 = vld [vmem:[#allocation5 + $0x2a0] ss:$16 sps:$4 sm:$0xff]   ;;  %p3893_p3 = scmp.lt.s32.totalorder %s2838_s24, %s2838_s24 }
  0x54   :  { %1727 = vmatpush1.bf16.msra.mxu0 %v3272_v6  ;;  %v3280_v12 = vld [vmem:[#allocation5 + $0x84] ss:$16 sps:$4 sm:$0xff]   ;;  %v3284_v14 = vld [vmem:[#allocation5 + $0x80] ss:$16 sps:$4 sm:$0xff]   ;;  %v4005_v49 = vsub.s32 %v119_v42, %v4002_v43  ;;  %v113_v42 = vld [vmem:[#allocation2 + $0x8] sm:$0xff] }
  0x55   :  { %1768 = vmatpush1.bf16.msra.mxu1 %v3273_v7  ;;  %1728 = vmatprep.subr.bf16.mxu0 %v3274_v8  ;;  %v3282_v13 = vld [vmem:[#allocation5 + $0x284] ss:$16 sps:$4 sm:$0xff]   ;;  %v3285_v15 = vld [vmem:[#allocation5 + $0x280] ss:$16 sps:$4 sm:$0xff]  }
  0x56   :  { %1769 = vmatprep.subr.bf16.mxu1 %v3276_v9  ;;  %v3286_v16 = vld [vmem:[#allocation5 + $0x64] ss:$16 sps:$4 sm:$0xff]   ;;  %v3290_v18 = vld [vmem:[#allocation5 + $0x60] ss:$16 sps:$4 sm:$0xff]  }
  0x57   :  { %v3288_v17 = vld [vmem:[#allocation5 + $0x264] ss:$16 sps:$4 sm:$0xff]   ;;  %v3291_v19 = vld [vmem:[#allocation5 + $0x260] ss:$16 sps:$4 sm:$0xff]  }
  0x58   :  { %1729 = vmatpush1.bf16.msra.mxu0 %v3278_v10  ;;  %v3292_v20 = vld [vmem:[#allocation5 + $0x44] ss:$16 sps:$4 sm:$0xff]   ;;  %v3296_v22 = vld [vmem:[#allocation5 + $0x40] ss:$16 sps:$4 sm:$0xff]  }
  0x59   :  { %1770 = vmatpush1.bf16.msra.mxu1 %v3279_v11  ;;  %1730 = vmatprep.subr.bf16.mxu0 %v3280_v12  ;;  %v3294_v21 = vld [vmem:[#allocation5 + $0x244] ss:$16 sps:$4 sm:$0xff]   ;;  %v3297_v23 = vld [vmem:[#allocation5 + $0x240] ss:$16 sps:$4 sm:$0xff]  }
  0x5a   :  { %1771 = vmatprep.subr.bf16.mxu1 %v3282_v13  ;;  %v3298_v24 = vld [vmem:[#allocation5 + $0x24] ss:$16 sps:$4 sm:$0xff]   ;;  %v3302_v26 = vld [vmem:[#allocation5 + $0x20] ss:$16 sps:$4 sm:$0xff]  }
  0x5b   :  { %v3300_v25 = vld [vmem:[#allocation5 + $0x224] ss:$16 sps:$4 sm:$0xff]   ;;  %v3303_v27 = vld [vmem:[#allocation5 + $0x220] ss:$16 sps:$4 sm:$0xff]  }
  0x5c   :  { %1731 = vmatpush1.bf16.msra.mxu0 %v3284_v14  ;;  %v3304_v28 = vld [vmem:[#allocation5 + $0x4] ss:$16 sps:$4 sm:$0xff]   ;;  %v3308_v30 = vld [vmem:[#allocation5] ss:$16 sps:$4 sm:$0xff]  }
  0x5d   :  { %1772 = vmatpush1.bf16.msra.mxu1 %v3285_v15  ;;  %1732 = vmatprep.subr.bf16.mxu0 %v3286_v16  ;;  %v3306_v29 = vld [vmem:[#allocation5 + $0x204] ss:$16 sps:$4 sm:$0xff]   ;;  %v3309_v31 = vld [vmem:[#allocation5 + $0x200] ss:$16 sps:$4 sm:$0xff]  }
  0x5e   :  { %1773 = vmatprep.subr.bf16.mxu1 %v3288_v17  ;;  %v3310_v32 = vld [vmem:[#allocation5 + $0x1e4] ss:$16 sps:$4 sm:$0xff]   ;;  %v3314_v34 = vld [vmem:[#allocation5 + $0x1e0] ss:$16 sps:$4 sm:$0xff]  }
  0x5f   :  { %v3312_v33 = vld [vmem:[#allocation5 + $0x3e4] ss:$16 sps:$4 sm:$0xff]   ;;  %v3315_v35 = vld [vmem:[#allocation5 + $0x3e0] ss:$16 sps:$4 sm:$0xff]  }
  0x60   :  { %1733 = vmatpush1.bf16.msra.mxu0 %v3290_v18  ;;  %v3316_v39 = vld [vmem:[#allocation5 + $0x1c4] ss:$16 sps:$4 sm:$0xff]   ;;  %v3320_v41 = vld [vmem:[#allocation5 + $0x1c0] ss:$16 sps:$4 sm:$0xff]  }
  0x61   :  { %1774 = vmatpush1.bf16.msra.mxu1 %v3291_v19  ;;  %1734 = vmatprep.subr.bf16.mxu0 %v3292_v20  ;;  %v3318_v40 = vld [vmem:[#allocation5 + $0x3c4] ss:$16 sps:$4 sm:$0xff]   ;;  %v3321_v44 = vld [vmem:[#allocation5 + $0x3c0] ss:$16 sps:$4 sm:$0xff]  }
  0x62   :  { %1775 = vmatprep.subr.bf16.mxu1 %v3294_v21  ;;  %v3322_v45 = vld [vmem:[#allocation5 + $0x1a4] ss:$16 sps:$4 sm:$0xff]   ;;  %v3326_v47 = vld [vmem:[#allocation5 + $0x1a0] ss:$16 sps:$4 sm:$0xff]  }
  0x63   :  { %v3324_v46 = vld [vmem:[#allocation5 + $0x3a4] ss:$16 sps:$4 sm:$0xff]   ;;  %v3327_v48 = vld [vmem:[#allocation5 + $0x3a0] ss:$16 sps:$4 sm:$0xff]  }
  0x64   :  { %1735 = vmatpush1.bf16.msra.mxu0 %v3296_v22  ;;  %v3328_v50 = vld [vmem:[#allocation5 + $0x184] ss:$16 sps:$4 sm:$0xff]   ;;  %v3332_v53 = vld [vmem:[#allocation5 + $0x180] ss:$16 sps:$4 sm:$0xff]  }
  0x65   :  { %1776 = vmatpush1.bf16.msra.mxu1 %v3297_v23  ;;  %1736 = vmatprep.subr.bf16.mxu0 %v3298_v24  ;;  %v3330_v51 = vld [vmem:[#allocation5 + $0x384] ss:$16 sps:$4 sm:$0xff]   ;;  %v3333_v56 = vld [vmem:[#allocation5 + $0x380] ss:$16 sps:$4 sm:$0xff]  }
  0x66   :  { %1777 = vmatprep.subr.bf16.mxu1 %v3300_v25  ;;  %v112_v52 = vld [vmem:[#allocation2] sm:$0xff] }
  0x67   :  { %v123_v54 = vrot.slane %v112_v52, %v4005_v49  ;;  %v116_v55 = vcombine.high %v112_v52, %v112_v52  ;;  %v3334_v57 = vld [vmem:[#allocation5 + $0x164] ss:$16 sps:$4 sm:$0xff]   ;;  %v3338_v61 = vld [vmem:[#allocation5 + $0x160] ss:$16 sps:$4 sm:$0xff]  }
  0x68   :  { %1737 = vmatpush1.bf16.msra.mxu0 %v3302_v26  ;;  %v3336_v58 = vld [vmem:[#allocation5 + $0x364] ss:$16 sps:$4 sm:$0xff]   ;;  %v3339_v0 = vld [vmem:[#allocation5 + $0x360] ss:$16 sps:$4 sm:$0xff]  }
  0x69   :  { %1778 = vmatpush1.bf16.msra.mxu1 %v3303_v27  ;;  %1738 = vmatprep.subr.bf16.mxu0 %v3304_v28  ;;  %v131_v59 = vcombine.high %v123_v54, %v123_v54  ;;  %v130_v60 = vrot.slane %v116_v55, %v4005_v49  ;;  %v3340_v1 = vld [vmem:[#allocation5 + $0x144] ss:$16 sps:$4 sm:$0xff]   ;;  %v3344_v4 = vld [vmem:[#allocation5 + $0x140] ss:$16 sps:$4 sm:$0xff]   ;;  %v4015_v16 = vpack.c.bf16 %v123_v54, %v123_v54 }
  0x6a   :  { %1779 = vmatprep.subr.bf16.mxu1 %v3306_v29  ;;  %v3342_v2 = vld [vmem:[#allocation5 + $0x344] ss:$16 sps:$4 sm:$0xff]   ;;  %v3345_v5 = vld [vmem:[#allocation5 + $0x340] ss:$16 sps:$4 sm:$0xff]  }
  0x6b   :  { %v4009_v62 = vpack.c.bf16 %v131_v59, %v131_v59  ;;  %v132_v63 = vcombine.high %v130_v60, %v130_v60  ;;  %v3346_v6 = vld [vmem:[#allocation5 + $0x124] ss:$16 sps:$4 sm:$0xff]   ;;  %v3350_v8 = vld [vmem:[#allocation5 + $0x120] ss:$16 sps:$4 sm:$0xff]   ;;  %v4017_v17 = vpack.c.bf16 %v130_v60, %v130_v60 }
  0x6c   :  { %1739 = vmatpush1.bf16.msra.mxu0 %v3308_v30  ;;  %v3348_v7 = vld [vmem:[#allocation5 + $0x324] ss:$16 sps:$4 sm:$0xff]   ;;  %v3351_v9 = vld [vmem:[#allocation5 + $0x320] ss:$16 sps:$4 sm:$0xff]  }
  0x6d   :  { %1780 = vmatpush1.bf16.msra.mxu1 %v3309_v31  ;;  %1740 = vmatprep.subr.bf16.mxu0 %v3310_v32  ;;  %v4011_v3 = vpack.c.bf16 %v132_v63, %v132_v63  ;;  %v3352_v10 = vld [vmem:[#allocation5 + $0x104] ss:$16 sps:$4 sm:$0xff]   ;;  %v3356_v12 = vld [vmem:[#allocation5 + $0x100] ss:$16 sps:$4 sm:$0xff]  }
  0x6e   :  { %1781 = vmatprep.subr.bf16.mxu1 %v3312_v33  ;;  %1756 = vmatprep.mubr.bf16.mxu0 %v4009_v62  ;;  %v3354_v11 = vld [vmem:[#allocation5 + $0x304] ss:$16 sps:$4 sm:$0xff]   ;;  %v3357_v13 = vld [vmem:[#allocation5 + $0x300] ss:$16 sps:$4 sm:$0xff]  }
  0x6f   :  { %1797 = vmatprep.mubr.bf16.mxu1 %v4011_v3  ;;  %v3361_v14 = vld [vmem:[#allocation5 + $0x4e4] ss:$16 sps:$4 sm:$0xff]   ;;  %v3359_v18 = vld [vmem:[#allocation5 + $0x4e0] ss:$16 sps:$4 sm:$0xff]  }
  0x70   :  { %1741 = vmatpush2.bf16.msra.mxu0 %v3314_v34  ;;  %v3364_v15 = vld [vmem:[#allocation5 + $0x6e4] ss:$16 sps:$4 sm:$0xff]   ;;  %v3362_v19 = vld [vmem:[#allocation5 + $0x6e0] ss:$16 sps:$4 sm:$0xff]  }
  0x71   :  { %1782 = vmatpush2.bf16.msra.mxu1 %v3315_v35  ;;  %1742 = vmatprep.subr.bf16.mxu0 %v3316_v39  ;;  %v3367_v20 = vld [vmem:[#allocation5 + $0x4c4] ss:$16 sps:$4 sm:$0xff]   ;;  %v3365_v22 = vld [vmem:[#allocation5 + $0x4c0] ss:$16 sps:$4 sm:$0xff]  }
  0x72   :  { %1783 = vmatprep.subr.bf16.mxu1 %v3318_v40  ;;  %v3370_v21 = vld [vmem:[#allocation5 + $0x6c4] ss:$16 sps:$4 sm:$0xff]   ;;  %v3368_v23 = vld [vmem:[#allocation5 + $0x6c0] ss:$16 sps:$4 sm:$0xff]  }
  0x73   :  { %v3373_v24 = vld [vmem:[#allocation5 + $0x4a4] ss:$16 sps:$4 sm:$0xff]   ;;  %v3371_v26 = vld [vmem:[#allocation5 + $0x4a0] ss:$16 sps:$4 sm:$0xff]  }
  0x74   :  { %1743 = vmatpush2.bf16.msra.mxu0 %v3320_v41  ;;  %v3376_v25 = vld [vmem:[#allocation5 + $0x6a4] ss:$16 sps:$4 sm:$0xff]   ;;  %v3374_v27 = vld [vmem:[#allocation5 + $0x6a0] ss:$16 sps:$4 sm:$0xff]  }
  0x75   :  { %1784 = vmatpush2.bf16.msra.mxu1 %v3321_v44  ;;  %1744 = vmatprep.subr.bf16.mxu0 %v3322_v45  ;;  %v3379_v28 = vld [vmem:[#allocation5 + $0x484] ss:$16 sps:$4 sm:$0xff]   ;;  %v3377_v30 = vld [vmem:[#allocation5 + $0x480] ss:$16 sps:$4 sm:$0xff]   ;;  %v4022_v44 = vrot.slane %v113_v42, %v4005_v49  ;;  %v133_v45 = vcombine.high %v113_v42, %v113_v42  ;;  %v3471_v42 = vld [vmem:[#allocation5 + $0x2a8] ss:$16 sps:$4 sm:$0xff]  }
  0x76   :  { %1785 = vmatprep.subr.bf16.mxu1 %v3324_v46  ;;  %v3382_v29 = vld [vmem:[#allocation5 + $0x684] ss:$16 sps:$4 sm:$0xff]   ;;  %v3380_v31 = vld [vmem:[#allocation5 + $0x680] ss:$16 sps:$4 sm:$0xff]  }
  0x77   :  { %v3385_v32 = vld [vmem:[#allocation5 + $0x464] ss:$16 sps:$4 sm:$0xff]   ;;  %v3383_v34 = vld [vmem:[#allocation5 + $0x460] ss:$16 sps:$4 sm:$0xff]  }
  0x78   :  { %1745 = vmatpush2.bf16.msra.mxu0 %v3326_v47  ;;  %v3388_v33 = vld [vmem:[#allocation5 + $0x664] ss:$16 sps:$4 sm:$0xff]   ;;  %v3386_v35 = vld [vmem:[#allocation5 + $0x660] ss:$16 sps:$4 sm:$0xff]  }
  0x79   :  { %1786 = vmatpush2.bf16.msra.mxu1 %v3327_v48  ;;  %1746 = vmatprep.subr.bf16.mxu0 %v3328_v50  ;;  %v3391_v36 = vld [vmem:[#allocation5 + $0x444] ss:$16 sps:$4 sm:$0xff]   ;;  %v3389_v38 = vld [vmem:[#allocation5 + $0x440] ss:$16 sps:$4 sm:$0xff]   ;;  %v148_v48 = vcombine.high %v4022_v44, %v4022_v44  ;;  %v4027_v50 = vrot.slane %v133_v45, %v4005_v49  ;;  %v3479_v45 = vld [vmem:[#allocation5 + $0x28c] ss:$16 sps:$4 sm:$0xff]  }
  0x7a   :  { %1787 = vmatprep.subr.bf16.mxu1 %v3330_v51  ;;  %v3394_v37 = vld [vmem:[#allocation5 + $0x644] ss:$16 sps:$4 sm:$0xff]   ;;  %v3392_v39 = vld [vmem:[#allocation5 + $0x640] ss:$16 sps:$4 sm:$0xff]  }
  0x7b   :  { %v3397_v40 = vld [vmem:[#allocation5 + $0x424] ss:$16 sps:$4 sm:$0xff]   ;;  %v3395_v46 = vld [vmem:[#allocation5 + $0x420] ss:$16 sps:$4 sm:$0xff]   ;;  %v149_v54 = vcombine.high %v4027_v50, %v4027_v50 }
  0x7c   :  { %1747 = vmatpush2.bf16.msra.mxu0 %v3332_v53  ;;  %v3400_v41 = vld [vmem:[#allocation5 + $0x624] ss:$16 sps:$4 sm:$0xff]   ;;  %v3398_v47 = vld [vmem:[#allocation5 + $0x620] ss:$16 sps:$4 sm:$0xff]   ;;  %v4029_v53 = vpack.c.bf16 %v148_v48, %v148_v48  ;;  %v3482_v48 = vld [vmem:[#allocation5 + $0x6c] ss:$16 sps:$4 sm:$0xff]  }
  0x7d   :  { %1788 = vmatpush2.bf16.msra.mxu1 %v3333_v56  ;;  %1748 = vmatprep.subr.bf16.mxu0 %v3334_v57  ;;  %v3403_v51 = vld [vmem:[#allocation5 + $0x404] ss:$16 sps:$4 sm:$0xff]   ;;  %v3401_v55 = vld [vmem:[#allocation5 + $0x400] ss:$16 sps:$4 sm:$0xff]   ;;  %v4033_v57 = vpack.c.bf16 %v149_v54, %v149_v54  ;;  %v3486_v54 = vld [vmem:[#allocation5 + $0x48] ss:$16 sps:$4 sm:$0xff]  }
  0x7e   :  { %1789 = vmatprep.subr.bf16.mxu1 %v3336_v58  ;;  %v3406_v52 = vld [vmem:[#allocation5 + $0x604] ss:$16 sps:$4 sm:$0xff]   ;;  %v3404_v56 = vld [vmem:[#allocation5 + $0x600] ss:$16 sps:$4 sm:$0xff]  }
  0x7f   :  { %v3409_v58 = vld [vmem:[#allocation5 + $0x5e4] ss:$16 sps:$4 sm:$0xff]   ;;  %v3407_v59 = vld [vmem:[#allocation5 + $0x5e0] ss:$16 sps:$4 sm:$0xff]  }
  0x80   :  { %1749 = vmatpush2.bf16.msra.mxu0 %v3338_v61  ;;  %v3412_v49 = vld [vmem:[#allocation5 + $0x7e4] ss:$16 sps:$4 sm:$0xff]   ;;  %v3410_v60 = vld [vmem:[#allocation5 + $0x7e0] ss:$16 sps:$4 sm:$0xff]  }
  0x81   :  { %1790 = vmatpush2.bf16.msra.mxu1 %v3339_v0  ;;  %1750 = vmatprep.subr.bf16.mxu0 %v3340_v1  ;;  %v3415_v61 = vld [vmem:[#allocation5 + $0x5c4] ss:$16 sps:$4 sm:$0xff]   ;;  %v3413_v0 = vld [vmem:[#allocation5 + $0x5c0] ss:$16 sps:$4 sm:$0xff]  }
  0x82   :  { %1791 = vmatprep.subr.bf16.mxu1 %v3342_v2  ;;  %v3418_v63 = vld [vmem:[#allocation5 + $0x7c4] ss:$16 sps:$4 sm:$0xff]   ;;  %v3416_v1 = vld [vmem:[#allocation5 + $0x7c0] ss:$16 sps:$4 sm:$0xff]  }
  0x83   :  { %v3421_v2 = vld [vmem:[#allocation5 + $0x5a4] ss:$16 sps:$4 sm:$0xff]  }
  0x84   :  { %1751 = vmatpush2.bf16.msra.mxu0 %v3344_v4  ;;  %v3424_v4 = vld [vmem:[#allocation5 + $0x7a4] ss:$16 sps:$4 sm:$0xff]  }
  0x85   :  { %1792 = vmatpush2.bf16.msra.mxu1 %v3345_v5  ;;  %1752 = vmatprep.subr.bf16.mxu0 %v3346_v6  ;;  %v3419_v5 = vld [vmem:[#allocation5 + $0x5a0] ss:$16 sps:$4 sm:$0xff]  }
  0x86   :  { %1793 = vmatprep.subr.bf16.mxu1 %v3348_v7  ;;  %v3422_v6 = vld [vmem:[#allocation5 + $0x7a0] ss:$16 sps:$4 sm:$0xff]   ;;  %v3427_v7 = vld [vmem:[#allocation5 + $0x584] ss:$16 sps:$4 sm:$0xff]  }
  0x88   :  { %1753 = vmatpush2.bf16.msra.mxu0 %v3350_v8  ;;  %v3430_v8 = vld [vmem:[#allocation5 + $0x784] ss:$16 sps:$4 sm:$0xff]  }
  0x89   :  { %1794 = vmatpush2.bf16.msra.mxu1 %v3351_v9  ;;  %1754 = vmatprep.subr.bf16.mxu0 %v3352_v10  ;;  %v3425_v9 = vld [vmem:[#allocation5 + $0x580] ss:$16 sps:$4 sm:$0xff]  }
  0x8a   :  { %1795 = vmatprep.subr.bf16.mxu1 %v3354_v11  ;;  %v3428_v10 = vld [vmem:[#allocation5 + $0x780] ss:$16 sps:$4 sm:$0xff]   ;;  %v3433_v11 = vld [vmem:[#allocation5 + $0x564] ss:$16 sps:$4 sm:$0xff]  }
  0x8c   :  { %1755 = vmatpush2.bf16.msra.mxu0 %v3356_v12  ;;  %v3436_v12 = vld [vmem:[#allocation5 + $0x764] ss:$16 sps:$4 sm:$0xff]  }
  0x8d   :  { %1796 = vmatpush2.bf16.msra.mxu1 %v3357_v13  ;;  %1806 = vmatprep.subr.bf16.mxu0 %v3361_v14  ;;  %v3431_v13 = vld [vmem:[#allocation5 + $0x560] ss:$16 sps:$4 sm:$0xff]  }
  0x8e   :  { %1847 = vmatprep.subr.bf16.mxu1 %v3364_v15  ;;  %v3434_v14 = vld [vmem:[#allocation5 + $0x760] ss:$16 sps:$4 sm:$0xff]   ;;  %v3439_v15 = vld [vmem:[#allocation5 + $0x544] ss:$16 sps:$4 sm:$0xff]  }
  0x8f   :  { %1757 = vmatmul.mubr.bf16.vlgmr.msra.gmra.mxu0 %v4015_v16 }
  0x90   :  { %1798 = vmatmul.mubr.bf16.vlgmr.msra.gmra.mxu1 %v4017_v17  ;;  %1807 = vmatpush1.bf16.msra.mxu0 %v3359_v18  ;;  %v3442_v18 = vld [vmem:[#allocation5 + $0x744] ss:$16 sps:$4 sm:$0xff]  }
  0x91   :  { %1848 = vmatpush1.bf16.msra.mxu1 %v3362_v19  ;;  %1808 = vmatprep.subr.bf16.mxu0 %v3367_v20  ;;  %v3437_v19 = vld [vmem:[#allocation5 + $0x540] ss:$16 sps:$4 sm:$0xff]  }
  0x92   :  { %1849 = vmatprep.subr.bf16.mxu1 %v3370_v21  ;;  %1838 = vmatprep.mubr.bf16.mxu0 %v4029_v53  ;;  %v3440_v20 = vld [vmem:[#allocation5 + $0x740] ss:$16 sps:$4 sm:$0xff]   ;;  %v3445_v21 = vld [vmem:[#allocation5 + $0x524] ss:$16 sps:$4 sm:$0xff]  }
  0x93   :  { %1879 = vmatprep.mubr.bf16.mxu1 %v4033_v57 }
  0x94   :  { %1809 = vmatpush1.bf16.msra.mxu0 %v3365_v22  ;;  %v3448_v22 = vld [vmem:[#allocation5 + $0x724] ss:$16 sps:$4 sm:$0xff]  }
  0x95   :  { %1850 = vmatpush1.bf16.msra.mxu1 %v3368_v23  ;;  %1810 = vmatprep.subr.bf16.mxu0 %v3373_v24  ;;  %v3443_v23 = vld [vmem:[#allocation5 + $0x520] ss:$16 sps:$4 sm:$0xff]  }
  0x96   :  { %1851 = vmatprep.subr.bf16.mxu1 %v3376_v25  ;;  %v3446_v24 = vld [vmem:[#allocation5 + $0x720] ss:$16 sps:$4 sm:$0xff]   ;;  %v3451_v25 = vld [vmem:[#allocation5 + $0x504] ss:$16 sps:$4 sm:$0xff]  }
  0x98   :  { %1811 = vmatpush1.bf16.msra.mxu0 %v3371_v26  ;;  %v3454_v26 = vld [vmem:[#allocation5 + $0x704] ss:$16 sps:$4 sm:$0xff]  }
  0x99   :  { %1852 = vmatpush1.bf16.msra.mxu1 %v3374_v27  ;;  %1812 = vmatprep.subr.bf16.mxu0 %v3379_v28  ;;  %v3449_v27 = vld [vmem:[#allocation5 + $0x500] ss:$16 sps:$4 sm:$0xff]  }
  0x9a   :  { %1853 = vmatprep.subr.bf16.mxu1 %v3382_v29  ;;  %v3452_v28 = vld [vmem:[#allocation5 + $0x700] ss:$16 sps:$4 sm:$0xff]   ;;  %v3458_v29 = vld [vmem:[#allocation5 + $0xec] ss:$16 sps:$4 sm:$0xff]  }
  0x9c   :  { %1813 = vmatpush1.bf16.msra.mxu0 %v3377_v30  ;;  %v3461_v30 = vld [vmem:[#allocation5 + $0x2ec] ss:$16 sps:$4 sm:$0xff]  }
  0x9d   :  { %1854 = vmatpush1.bf16.msra.mxu1 %v3380_v31  ;;  %1814 = vmatprep.subr.bf16.mxu0 %v3385_v32  ;;  %v4039_v31 = vpack.c.bf16 %v4022_v44, %v4022_v44  ;;  %v4043_v32 = vpack.c.bf16 %v4027_v50, %v4027_v50  ;;  %v3476_v44 = vld [vmem:[#allocation5 + $0x8c] ss:$16 sps:$4 sm:$0xff]  }
  0x9e   :  { %1855 = vmatprep.subr.bf16.mxu1 %v3388_v33  ;;  %v3456_v33 = vld [vmem:[#allocation5 + $0xe8] ss:$16 sps:$4 sm:$0xff]   ;;  %v3485_v50 = vld [vmem:[#allocation5 + $0x26c] ss:$16 sps:$4 sm:$0xff]  }
  0xa0   :  { %1815 = vmatpush1.bf16.msra.mxu0 %v3383_v34  ;;  %v3459_v34 = vld [vmem:[#allocation5 + $0x2e8] ss:$16 sps:$4 sm:$0xff]  }
  0xa1   :  { %1856 = vmatpush1.bf16.msra.mxu1 %v3386_v35  ;;  %1816 = vmatprep.subr.bf16.mxu0 %v3391_v36  ;;  %v3464_v35 = vld [vmem:[#allocation5 + $0xcc] ss:$16 sps:$4 sm:$0xff]  }
  0xa2   :  { %1857 = vmatprep.subr.bf16.mxu1 %v3394_v37  ;;  %v3467_v36 = vld [vmem:[#allocation5 + $0x2cc] ss:$16 sps:$4 sm:$0xff]   ;;  %v3462_v37 = vld [vmem:[#allocation5 + $0xc8] ss:$16 sps:$4 sm:$0xff]  }
  0xa4   :  { %1817 = vmatpush1.bf16.msra.mxu0 %v3389_v38  ;;  %v3465_v38 = vld [vmem:[#allocation5 + $0x2c8] ss:$16 sps:$4 sm:$0xff]  }
  0xa5   :  { %1858 = vmatpush1.bf16.msra.mxu1 %v3392_v39  ;;  %1818 = vmatprep.subr.bf16.mxu0 %v3397_v40  ;;  %v3470_v39 = vld [vmem:[#allocation5 + $0xac] ss:$16 sps:$4 sm:$0xff]  }
  0xa6   :  { %1859 = vmatprep.subr.bf16.mxu1 %v3400_v41  ;;  %v3473_v40 = vld [vmem:[#allocation5 + $0x2ac] ss:$16 sps:$4 sm:$0xff]   ;;  %v3468_v41 = vld [vmem:[#allocation5 + $0xa8] ss:$16 sps:$4 sm:$0xff]  }
  0xa8   :  { %1819 = vmatpush1.bf16.msra.mxu0 %v3395_v46  ;;  %v3474_v46 = vld [vmem:[#allocation5 + $0x88] ss:$16 sps:$4 sm:$0xff]  }
  0xa9   :  { %1860 = vmatpush1.bf16.msra.mxu1 %v3398_v47  ;;  %1820 = vmatprep.subr.bf16.mxu0 %v3403_v51  ;;  %v3477_v47 = vld [vmem:[#allocation5 + $0x288] ss:$16 sps:$4 sm:$0xff]   ;;  %v3488_v51 = vld [vmem:[#allocation5 + $0x4c] ss:$16 sps:$4 sm:$0xff]  }
  0xaa   :  { %1861 = vmatprep.subr.bf16.mxu1 %v3406_v52  ;;  %v3491_v52 = vld [vmem:[#allocation5 + $0x24c] ss:$16 sps:$4 sm:$0xff]  }
  0xac   :  { %1821 = vmatpush1.bf16.msra.mxu0 %v3401_v55  ;;  %v3489_v55 = vld [vmem:[#allocation5 + $0x248] ss:$16 sps:$4 sm:$0xff]  }
  0xad   :  { %1862 = vmatpush1.bf16.msra.mxu1 %v3404_v56  ;;  %1822 = vmatprep.subr.bf16.mxu0 %v3409_v58  ;;  %v3494_v56 = vld [vmem:[#allocation5 + $0x2c] ss:$16 sps:$4 sm:$0xff]  }
  0xae   :  { %1863 = vmatprep.subr.bf16.mxu1 %v3412_v49  ;;  %v3497_v58 = vld [vmem:[#allocation5 + $0x22c] ss:$16 sps:$4 sm:$0xff]   ;;  %v3492_v49 = vld [vmem:[#allocation5 + $0x28] ss:$16 sps:$4 sm:$0xff]  }
  0xb0   :  { %1823 = vmatpush2.bf16.msra.mxu0 %v3407_v59  ;;  %v3495_v59 = vld [vmem:[#allocation5 + $0x228] ss:$16 sps:$4 sm:$0xff]  }
  0xb1   :  { %1864 = vmatpush2.bf16.msra.mxu1 %v3410_v60  ;;  %1824 = vmatprep.subr.bf16.mxu0 %v3415_v61  ;;  %v3500_v60 = vld [vmem:[#allocation5 + $0xc] ss:$16 sps:$4 sm:$0xff]  }
  0xb2   :  { %1865 = vmatprep.subr.bf16.mxu1 %v3418_v63  ;;  %v3503_v61 = vld [vmem:[#allocation5 + $0x20c] ss:$16 sps:$4 sm:$0xff]   ;;  %v3498_v63 = vld [vmem:[#allocation5 + $0x8] ss:$16 sps:$4 sm:$0xff]  }
  0xb4   :  { %1825 = vmatpush2.bf16.msra.mxu0 %v3413_v0  ;;  %v3501_v0 = vld [vmem:[#allocation5 + $0x208] ss:$16 sps:$4 sm:$0xff]  }
  0xb5   :  { %1866 = vmatpush2.bf16.msra.mxu1 %v3416_v1  ;;  %1826 = vmatprep.subr.bf16.mxu0 %v3421_v2  ;;  %v3506_v1 = vld [vmem:[#allocation5 + $0x1ec] ss:$16 sps:$4 sm:$0xff]  }
  0xb6   :  { %1867 = vmatprep.subr.bf16.mxu1 %v3424_v4  ;;  %v3509_v2 = vld [vmem:[#allocation5 + $0x3ec] ss:$16 sps:$4 sm:$0xff]   ;;  %v3504_v4 = vld [vmem:[#allocation5 + $0x1e8] ss:$16 sps:$4 sm:$0xff]  }
  0xb8   :  { %1827 = vmatpush2.bf16.msra.mxu0 %v3419_v5  ;;  %v3507_v5 = vld [vmem:[#allocation5 + $0x3e8] ss:$16 sps:$4 sm:$0xff]  }
  0xb9   :  { %1868 = vmatpush2.bf16.msra.mxu1 %v3422_v6  ;;  %1828 = vmatprep.subr.bf16.mxu0 %v3427_v7  ;;  %v3512_v6 = vld [vmem:[#allocation5 + $0x1cc] ss:$16 sps:$4 sm:$0xff]  }
  0xba   :  { %1869 = vmatprep.subr.bf16.mxu1 %v3430_v8  ;;  %v3515_v7 = vld [vmem:[#allocation5 + $0x3cc] ss:$16 sps:$4 sm:$0xff]   ;;  %v3510_v8 = vld [vmem:[#allocation5 + $0x1c8] ss:$16 sps:$4 sm:$0xff]  }
  0xbc   :  { %1829 = vmatpush2.bf16.msra.mxu0 %v3425_v9  ;;  %v3513_v9 = vld [vmem:[#allocation5 + $0x3c8] ss:$16 sps:$4 sm:$0xff]  }
  0xbd   :  { %1870 = vmatpush2.bf16.msra.mxu1 %v3428_v10  ;;  %1830 = vmatprep.subr.bf16.mxu0 %v3433_v11  ;;  %v3518_v10 = vld [vmem:[#allocation5 + $0x1ac] ss:$16 sps:$4 sm:$0xff]  }
  0xbe   :  { %1871 = vmatprep.subr.bf16.mxu1 %v3436_v12  ;;  %v3521_v11 = vld [vmem:[#allocation5 + $0x3ac] ss:$16 sps:$4 sm:$0xff]   ;;  %v3516_v12 = vld [vmem:[#allocation5 + $0x1a8] ss:$16 sps:$4 sm:$0xff]  }
  0xc0   :  { %1831 = vmatpush2.bf16.msra.mxu0 %v3431_v13  ;;  %v3519_v13 = vld [vmem:[#allocation5 + $0x3a8] ss:$16 sps:$4 sm:$0xff]  }
  0xc1   :  { %1872 = vmatpush2.bf16.msra.mxu1 %v3434_v14  ;;  %1832 = vmatprep.subr.bf16.mxu0 %v3439_v15  ;;  %v3524_v14 = vld [vmem:[#allocation5 + $0x18c] ss:$16 sps:$4 sm:$0xff]  }
  0xc2   :  { %1873 = vmatprep.subr.bf16.mxu1 %v3442_v18  ;;  %v3527_v15 = vld [vmem:[#allocation5 + $0x38c] ss:$16 sps:$4 sm:$0xff]   ;;  %v3522_v18 = vld [vmem:[#allocation5 + $0x188] ss:$16 sps:$4 sm:$0xff]  }
  0xc4   :  { %1833 = vmatpush2.bf16.msra.mxu0 %v3437_v19  ;;  %v3525_v19 = vld [vmem:[#allocation5 + $0x388] ss:$16 sps:$4 sm:$0xff]  }
  0xc5   :  { %1874 = vmatpush2.bf16.msra.mxu1 %v3440_v20  ;;  %1834 = vmatprep.subr.bf16.mxu0 %v3445_v21  ;;  %v3530_v20 = vld [vmem:[#allocation5 + $0x16c] ss:$16 sps:$4 sm:$0xff]  }
  0xc6   :  { %1875 = vmatprep.subr.bf16.mxu1 %v3448_v22  ;;  %v3533_v21 = vld [vmem:[#allocation5 + $0x36c] ss:$16 sps:$4 sm:$0xff]   ;;  %v3528_v22 = vld [vmem:[#allocation5 + $0x168] ss:$16 sps:$4 sm:$0xff]  }
  0xc8   :  { %1835 = vmatpush2.bf16.msra.mxu0 %v3443_v23  ;;  %v3531_v23 = vld [vmem:[#allocation5 + $0x368] ss:$16 sps:$4 sm:$0xff]  }
  0xc9   :  { %1876 = vmatpush2.bf16.msra.mxu1 %v3446_v24  ;;  %1836 = vmatprep.subr.bf16.mxu0 %v3451_v25  ;;  %v3536_v24 = vld [vmem:[#allocation5 + $0x14c] ss:$16 sps:$4 sm:$0xff]  }
  0xca   :  { %1877 = vmatprep.subr.bf16.mxu1 %v3454_v26  ;;  %v3539_v25 = vld [vmem:[#allocation5 + $0x34c] ss:$16 sps:$4 sm:$0xff]   ;;  %v3534_v26 = vld [vmem:[#allocation5 + $0x148] ss:$16 sps:$4 sm:$0xff]  }
  0xcc   :  { %1837 = vmatpush2.bf16.msra.mxu0 %v3449_v27  ;;  %v3537_v27 = vld [vmem:[#allocation5 + $0x348] ss:$16 sps:$4 sm:$0xff]  }
  0xcd   :  { %1878 = vmatpush2.bf16.msra.mxu1 %v3452_v28  ;;  %1888 = vmatprep.subr.bf16.mxu0 %v3458_v29  ;;  %v3542_v28 = vld [vmem:[#allocation5 + $0x12c] ss:$16 sps:$4 sm:$0xff]  }
  0xce   :  { %1929 = vmatprep.subr.bf16.mxu1 %v3461_v30  ;;  %v3545_v29 = vld [vmem:[#allocation5 + $0x32c] ss:$16 sps:$4 sm:$0xff]   ;;  %v3540_v30 = vld [vmem:[#allocation5 + $0x128] ss:$16 sps:$4 sm:$0xff]  }
  0xcf   :  { %1839 = vmatmul.mubr.bf16.vlgmr.msra.gmra.mxu0 %v4039_v31 }
  0xd0   :  { %1880 = vmatmul.mubr.bf16.vlgmr.msra.gmra.mxu1 %v4043_v32  ;;  %1889 = vmatpush1.bf16.msra.mxu0 %v3456_v33  ;;  %v3543_v33 = vld [vmem:[#allocation5 + $0x328] ss:$16 sps:$4 sm:$0xff]  }
  0xd1   :  { %1930 = vmatpush1.bf16.msra.mxu1 %v3459_v34  ;;  %1890 = vmatprep.subr.bf16.mxu0 %v3464_v35  ;;  %v3548_v34 = vld [vmem:[#allocation5 + $0x10c] ss:$16 sps:$4 sm:$0xff]  }
  0xd2   :  { %1931 = vmatprep.subr.bf16.mxu1 %v3467_v36  ;;  %1920 = vmatprep.mubr.bf16.mxu0 %v4009_v62  ;;  %v3480_v62 = vld [vmem:[#allocation5 + $0x68] ss:$16 sps:$4 sm:$0xff]   ;;  %v3551_v35 = vld [vmem:[#allocation5 + $0x30c] ss:$16 sps:$4 sm:$0xff]  }
  0xd3   :  { %1961 = vmatprep.mubr.bf16.mxu1 %v4011_v3  ;;  %v3483_v3 = vld [vmem:[#allocation5 + $0x268] ss:$16 sps:$4 sm:$0xff]  }
  0xd4   :  { %1891 = vmatpush1.bf16.msra.mxu0 %v3462_v37  ;;  %v3546_v36 = vld [vmem:[#allocation5 + $0x108] ss:$16 sps:$4 sm:$0xff]  }
  0xd5   :  { %1932 = vmatpush1.bf16.msra.mxu1 %v3465_v38  ;;  %1892 = vmatprep.subr.bf16.mxu0 %v3470_v39  ;;  %v3549_v37 = vld [vmem:[#allocation5 + $0x308] ss:$16 sps:$4 sm:$0xff]   ;;  %v3554_v38 = vld [vmem:[#allocation5 + $0x4ec] ss:$16 sps:$4 sm:$0xff]  }
  0xd6   :  { %1933 = vmatprep.subr.bf16.mxu1 %v3473_v40  ;;  %v3557_v39 = vld [vmem:[#allocation5 + $0x6ec] ss:$16 sps:$4 sm:$0xff]   ;;  %v3552_v40 = vld [vmem:[#allocation5 + $0x4e8] ss:$16 sps:$4 sm:$0xff]  }
  0xd8   :  { %1893 = vmatpush1.bf16.msra.mxu0 %v3468_v41  ;;  %v3555_v41 = vld [vmem:[#allocation5 + $0x6e8] ss:$16 sps:$4 sm:$0xff]  }
  0xd9   :  { %1934 = vmatpush1.bf16.msra.mxu1 %v3471_v42  ;;  %1894 = vmatprep.subr.bf16.mxu0 %v3476_v44  ;;  %v3560_v42 = vld [vmem:[#allocation5 + $0x4cc] ss:$16 sps:$4 sm:$0xff]  }
  0xda   :  { %1935 = vmatprep.subr.bf16.mxu1 %v3479_v45  ;;  %v3563_v44 = vld [vmem:[#allocation5 + $0x6cc] ss:$16 sps:$4 sm:$0xff]   ;;  %v3558_v45 = vld [vmem:[#allocation5 + $0x4c8] ss:$16 sps:$4 sm:$0xff]  }
  0xdc   :  { %1895 = vmatpush1.bf16.msra.mxu0 %v3474_v46  ;;  %v3561_v46 = vld [vmem:[#allocation5 + $0x6c8] ss:$16 sps:$4 sm:$0xff]  }
  0xdd   :  { %1936 = vmatpush1.bf16.msra.mxu1 %v3477_v47  ;;  %1896 = vmatprep.subr.bf16.mxu0 %v3482_v48  ;;  %v3566_v47 = vld [vmem:[#allocation5 + $0x4ac] ss:$16 sps:$4 sm:$0xff]  }
  0xde   :  { %1937 = vmatprep.subr.bf16.mxu1 %v3485_v50  ;;  %v3569_v48 = vld [vmem:[#allocation5 + $0x6ac] ss:$16 sps:$4 sm:$0xff]   ;;  %v3564_v50 = vld [vmem:[#allocation5 + $0x4a8] ss:$16 sps:$4 sm:$0xff]  }
  0xe0   :  { %1897 = vmatpush1.bf16.msra.mxu0 %v3480_v62  ;;  %v3567_v62 = vld [vmem:[#allocation5 + $0x6a8] ss:$16 sps:$4 sm:$0xff]  }
  0xe1   :  { %1938 = vmatpush1.bf16.msra.mxu1 %v3483_v3  ;;  %1898 = vmatprep.subr.bf16.mxu0 %v3488_v51  ;;  %v3572_v3 = vld [vmem:[#allocation5 + $0x48c] ss:$16 sps:$4 sm:$0xff]   ;;  %v3570_v51 = vld [vmem:[#allocation5 + $0x488] ss:$16 sps:$4 sm:$0xff]  }
  0xe2   :  { %1939 = vmatprep.subr.bf16.mxu1 %v3491_v52  ;;  %v3578_v52 = vld [vmem:[#allocation5 + $0x46c] ss:$16 sps:$4 sm:$0xff]  }
  0xe4   :  { %1899 = vmatpush1.bf16.msra.mxu0 %v3486_v54  ;;  %v3581_v54 = vld [vmem:[#allocation5 + $0x66c] ss:$16 sps:$4 sm:$0xff]  }
  0xe5   :  { %1940 = vmatpush1.bf16.msra.mxu1 %v3489_v55  ;;  %1900 = vmatprep.subr.bf16.mxu0 %v3494_v56  ;;  %v3576_v55 = vld [vmem:[#allocation5 + $0x468] ss:$16 sps:$4 sm:$0xff]  }
  0xe6   :  { %1941 = vmatprep.subr.bf16.mxu1 %v3497_v58  ;;  %v3579_v56 = vld [vmem:[#allocation5 + $0x668] ss:$16 sps:$4 sm:$0xff]   ;;  %v3584_v58 = vld [vmem:[#allocation5 + $0x44c] ss:$16 sps:$4 sm:$0xff]  }
  0xe8   :  { %1901 = vmatpush1.bf16.msra.mxu0 %v3492_v49  ;;  %v3585_v49 = vld [vmem:[#allocation5 + $0x648] ss:$16 sps:$4 sm:$0xff]  }
  0xe9   :  { %1942 = vmatpush1.bf16.msra.mxu1 %v3495_v59  ;;  %1902 = vmatprep.subr.bf16.mxu0 %v3500_v60  ;;  %v3590_v59 = vld [vmem:[#allocation5 + $0x42c] ss:$16 sps:$4 sm:$0xff]  }
  0xea   :  { %1943 = vmatprep.subr.bf16.mxu1 %v3503_v61  ;;  %v3593_v60 = vld [vmem:[#allocation5 + $0x62c] ss:$16 sps:$4 sm:$0xff]   ;;  %v3588_v61 = vld [vmem:[#allocation5 + $0x428] ss:$16 sps:$4 sm:$0xff]  }
  0xec   :  { %1903 = vmatpush1.bf16.msra.mxu0 %v3498_v63  ;;  %v3591_v63 = vld [vmem:[#allocation5 + $0x628] ss:$16 sps:$4 sm:$0xff]  }
  0xed   :  { %1944 = vmatpush1.bf16.msra.mxu1 %v3501_v0  ;;  %1904 = vmatprep.subr.bf16.mxu0 %v3506_v1  ;;  %v3596_v0 = vld [vmem:[#allocation5 + $0x40c] ss:$16 sps:$4 sm:$0xff]  }
  0xee   :  { %1945 = vmatprep.subr.bf16.mxu1 %v3509_v2  ;;  %v3599_v1 = vld [vmem:[#allocation5 + $0x60c] ss:$16 sps:$4 sm:$0xff]   ;;  %v3594_v2 = vld [vmem:[#allocation5 + $0x408] ss:$16 sps:$4 sm:$0xff]  }
  0xf0   :  { %1905 = vmatpush2.bf16.msra.mxu0 %v3504_v4  ;;  %v3597_v4 = vld [vmem:[#allocation5 + $0x608] ss:$16 sps:$4 sm:$0xff]  }
  0xf1   :  { %1946 = vmatpush2.bf16.msra.mxu1 %v3507_v5  ;;  %1906 = vmatprep.subr.bf16.mxu0 %v3512_v6  ;;  %v3602_v5 = vld [vmem:[#allocation5 + $0x5ec] ss:$16 sps:$4 sm:$0xff]  }
  0xf2   :  { %1947 = vmatprep.subr.bf16.mxu1 %v3515_v7  ;;  %v3605_v6 = vld [vmem:[#allocation5 + $0x7ec] ss:$16 sps:$4 sm:$0xff]   ;;  %v3600_v7 = vld [vmem:[#allocation5 + $0x5e8] ss:$16 sps:$4 sm:$0xff]  }
  0xf4   :  { %1907 = vmatpush2.bf16.msra.mxu0 %v3510_v8  ;;  %v3603_v8 = vld [vmem:[#allocation5 + $0x7e8] ss:$16 sps:$4 sm:$0xff]  }
  0xf5   :  { %1948 = vmatpush2.bf16.msra.mxu1 %v3513_v9  ;;  %1908 = vmatprep.subr.bf16.mxu0 %v3518_v10  ;;  %v3608_v9 = vld [vmem:[#allocation5 + $0x5cc] ss:$16 sps:$4 sm:$0xff]  }
  0xf6   :  { %1949 = vmatprep.subr.bf16.mxu1 %v3521_v11  ;;  %v3611_v10 = vld [vmem:[#allocation5 + $0x7cc] ss:$16 sps:$4 sm:$0xff]   ;;  %v3606_v11 = vld [vmem:[#allocation5 + $0x5c8] ss:$16 sps:$4 sm:$0xff]  }
  0xf8   :  { %1909 = vmatpush2.bf16.msra.mxu0 %v3516_v12  ;;  %v3609_v12 = vld [vmem:[#allocation5 + $0x7c8] ss:$16 sps:$4 sm:$0xff]  }
  0xf9   :  { %1950 = vmatpush2.bf16.msra.mxu1 %v3519_v13  ;;  %1910 = vmatprep.subr.bf16.mxu0 %v3524_v14  ;;  %v3614_v13 = vld [vmem:[#allocation5 + $0x5ac] ss:$16 sps:$4 sm:$0xff]  }
  0xfa   :  { %1951 = vmatprep.subr.bf16.mxu1 %v3527_v15  ;;  %v3617_v14 = vld [vmem:[#allocation5 + $0x7ac] ss:$16 sps:$4 sm:$0xff]   ;;  %v3612_v15 = vld [vmem:[#allocation5 + $0x5a8] ss:$16 sps:$4 sm:$0xff]  }
  0xfc   :  { %1911 = vmatpush2.bf16.msra.mxu0 %v3522_v18  ;;  %v3615_v18 = vld [vmem:[#allocation5 + $0x7a8] ss:$16 sps:$4 sm:$0xff]  }
  0xfd   :  { %1952 = vmatpush2.bf16.msra.mxu1 %v3525_v19  ;;  %1912 = vmatprep.subr.bf16.mxu0 %v3530_v20  ;;  %v3620_v19 = vld [vmem:[#allocation5 + $0x58c] ss:$16 sps:$4 sm:$0xff]  }
  0xfe   :  { %1953 = vmatprep.subr.bf16.mxu1 %v3533_v21  ;;  %v3623_v20 = vld [vmem:[#allocation5 + $0x78c] ss:$16 sps:$4 sm:$0xff]   ;;  %v3618_v21 = vld [vmem:[#allocation5 + $0x588] ss:$16 sps:$4 sm:$0xff]  }
 0x100   :  { %1913 = vmatpush2.bf16.msra.mxu0 %v3528_v22  ;;  %v3621_v22 = vld [vmem:[#allocation5 + $0x788] ss:$16 sps:$4 sm:$0xff]  }
 0x101   :  { %1954 = vmatpush2.bf16.msra.mxu1 %v3531_v23  ;;  %1914 = vmatprep.subr.bf16.mxu0 %v3536_v24  ;;  %v3626_v23 = vld [vmem:[#allocation5 + $0x56c] ss:$16 sps:$4 sm:$0xff]  }
 0x102   :  { %1955 = vmatprep.subr.bf16.mxu1 %v3539_v25  ;;  %v3629_v24 = vld [vmem:[#allocation5 + $0x76c] ss:$16 sps:$4 sm:$0xff]   ;;  %v3624_v25 = vld [vmem:[#allocation5 + $0x568] ss:$16 sps:$4 sm:$0xff]  }
 0x104   :  { %1915 = vmatpush2.bf16.msra.mxu0 %v3534_v26  ;;  %v3627_v26 = vld [vmem:[#allocation5 + $0x768] ss:$16 sps:$4 sm:$0xff]  }
 0x105   :  { %1956 = vmatpush2.bf16.msra.mxu1 %v3537_v27  ;;  %1916 = vmatprep.subr.bf16.mxu0 %v3542_v28  ;;  %v3632_v27 = vld [vmem:[#allocation5 + $0x54c] ss:$16 sps:$4 sm:$0xff]  }
 0x106   :  { %1957 = vmatprep.subr.bf16.mxu1 %v3545_v29  ;;  %v3635_v28 = vld [vmem:[#allocation5 + $0x74c] ss:$16 sps:$4 sm:$0xff]   ;;  %v3630_v29 = vld [vmem:[#allocation5 + $0x548] ss:$16 sps:$4 sm:$0xff]  }
 0x108   :  { %1917 = vmatpush2.bf16.msra.mxu0 %v3540_v30  ;;  %v3633_v30 = vld [vmem:[#allocation5 + $0x748] ss:$16 sps:$4 sm:$0xff]  }
 0x109   :  { %1958 = vmatpush2.bf16.msra.mxu1 %v3543_v33  ;;  %1918 = vmatprep.subr.bf16.mxu0 %v3548_v34  ;;  %v3638_v33 = vld [vmem:[#allocation5 + $0x52c] ss:$16 sps:$4 sm:$0xff]  }
 0x10a   :  { %1959 = vmatprep.subr.bf16.mxu1 %v3551_v35  ;;  %v3641_v34 = vld [vmem:[#allocation5 + $0x72c] ss:$16 sps:$4 sm:$0xff]   ;;  %v3636_v35 = vld [vmem:[#allocation5 + $0x528] ss:$16 sps:$4 sm:$0xff]  }
 0x10c   :  { %1919 = vmatpush2.bf16.msra.mxu0 %v3546_v36  ;;  %v3639_v36 = vld [vmem:[#allocation5 + $0x728] ss:$16 sps:$4 sm:$0xff]  }
 0x10d   :  { %1960 = vmatpush2.bf16.msra.mxu1 %v3549_v37  ;;  %1970 = vmatprep.subr.bf16.mxu0 %v3554_v38  ;;  %v3644_v37 = vld [vmem:[#allocation5 + $0x50c] ss:$16 sps:$4 sm:$0xff]  }
 0x10e   :  { %2011 = vmatprep.subr.bf16.mxu1 %v3557_v39  ;;  %v3647_v38 = vld [vmem:[#allocation5 + $0x70c] ss:$16 sps:$4 sm:$0xff]   ;;  %v3642_v39 = vld [vmem:[#allocation5 + $0x508] ss:$16 sps:$4 sm:$0xff]  }
 0x10f   :  { %1921 = vmatmul.mubr.bf16.vlgmr.msra.gmra.mxu0 %v4015_v16  ;;  %v3575_v16 = vld [vmem:[#allocation5 + $0x68c] ss:$16 sps:$4 sm:$0xff]  }
 0x110   :  { %1962 = vmatmul.mubr.bf16.vlgmr.msra.gmra.mxu1 %v4017_v17  ;;  %1971 = vmatpush1.bf16.msra.mxu0 %v3552_v40  ;;  %v3573_v17 = vld [vmem:[#allocation5 + $0x688] ss:$16 sps:$4 sm:$0xff]  }
 0x111   :  { %2012 = vmatpush1.bf16.msra.mxu1 %v3555_v41  ;;  %1972 = vmatprep.subr.bf16.mxu0 %v3560_v42  ;;  %v3645_v40 = vld [vmem:[#allocation5 + $0x708] ss:$16 sps:$4 sm:$0xff]   ;;  %v3648_v42 = vld [vmem:[#allocation8 + $0x70] ss:$8 sps:$4 sm:$0xff]  }
 0x112   :  { %2013 = vmatprep.subr.bf16.mxu1 %v3563_v44  ;;  %2002 = vmatprep.mubr.bf16.mxu0 %v4029_v53  ;;  %v3587_v53 = vld [vmem:[#allocation5 + $0x64c] ss:$16 sps:$4 sm:$0xff]   ;;  %v3650_v41 = vld [vmem:[#allocation8 + $0x74] ss:$8 sps:$4 sm:$0xff]   ;;  %v3653_v44 = vld [vmem:[#allocation8 + $0x64] ss:$8 sps:$4 sm:$0xff]  }
 0x113   :  { %2043 = vmatprep.mubr.bf16.mxu1 %v4033_v57  ;;  %v3582_v57 = vld [vmem:[#allocation5 + $0x448] ss:$16 sps:$4 sm:$0xff]  }
 0x114   :  { %1973 = vmatpush1.bf16.msra.mxu0 %v3558_v45 }
 0x115   :  { %2014 = vmatpush1.bf16.msra.mxu1 %v3561_v46  ;;  %1974 = vmatprep.subr.bf16.mxu0 %v3566_v47  ;;  %v3651_v47 = vld [vmem:[#allocation8 + $0x60] ss:$8 sps:$4 sm:$0xff]  }
 0x116   :  { %2015 = vmatprep.subr.bf16.mxu1 %v3569_v48 }
 0x118   :  { %1975 = vmatpush1.bf16.msra.mxu0 %v3564_v50 }
 0x119   :  { %2016 = vmatpush1.bf16.msra.mxu1 %v3567_v62  ;;  %1976 = vmatprep.subr.bf16.mxu0 %v3572_v3  ;;  %v3656_v62 = vld [vmem:[#allocation8 + $0x54] ss:$8 sps:$4 sm:$0xff]  }
 0x11a   :  { %2017 = vmatprep.subr.bf16.mxu1 %v3575_v16 }
 0x11c   :  { %1977 = vmatpush1.bf16.msra.mxu0 %v3570_v51  ;;  %v3654_v51 = vld [vmem:[#allocation8 + $0x50] ss:$8 sps:$4 sm:$0xff]  }
 0x11d   :  { %2018 = vmatpush1.bf16.msra.mxu1 %v3573_v17  ;;  %1978 = vmatprep.subr.bf16.mxu0 %v3578_v52 }
 0x11e   :  { %2019 = vmatprep.subr.bf16.mxu1 %v3581_v54  ;;  %v3659_v54 = vld [vmem:[#allocation8 + $0x44] ss:$8 sps:$4 sm:$0xff]  }
 0x120   :  { %1979 = vmatpush1.bf16.msra.mxu0 %v3576_v55  ;;  %v3696_v55 = vld [vmem:[#allocation8 + $0x170] ss:$8 sps:$4 sm:$0xff]  }
 0x121   :  { %2020 = vmatpush1.bf16.msra.mxu1 %v3579_v56  ;;  %1980 = vmatprep.subr.bf16.mxu0 %v3584_v58  ;;  %v3701_v56 = vld [vmem:[#allocation8 + $0x164] ss:$8 sps:$4 sm:$0xff]   ;;  %v3699_v58 = vld [vmem:[#allocation8 + $0x160] ss:$8 sps:$4 sm:$0xff]  }
 0x122   :  { %2021 = vmatprep.subr.bf16.mxu1 %v3587_v53  ;;  %v3662_v53 = vld [vmem:[#allocation8 + $0x34] ss:$8 sps:$4 sm:$0xff]  }
 0x124   :  { %1981 = vmatpush1.bf16.msra.mxu0 %v3582_v57  ;;  %v3704_v57 = vld [vmem:[#allocation8 + $0x154] ss:$8 sps:$4 sm:$0xff]  }
 0x125   :  { %2022 = vmatpush1.bf16.msra.mxu1 %v3585_v49  ;;  %1982 = vmatprep.subr.bf16.mxu0 %v3590_v59  ;;  %v3660_v49 = vld [vmem:[#allocation8 + $0x30] ss:$8 sps:$4 sm:$0xff]  }
 0x126   :  { %2023 = vmatprep.subr.bf16.mxu1 %v3593_v60  ;;  %v3702_v59 = vld [vmem:[#allocation8 + $0x150] ss:$8 sps:$4 sm:$0xff]   ;;  %v3665_v60 = vld [vmem:[#allocation8 + $0x24] ss:$8 sps:$4 sm:$0xff]  }
 0x128   :  { %1983 = vmatpush1.bf16.msra.mxu0 %v3588_v61  ;;  %v3707_v61 = vld [vmem:[#allocation8 + $0x144] ss:$8 sps:$4 sm:$0xff]  }
 0x129   :  { %2024 = vmatpush1.bf16.msra.mxu1 %v3591_v63  ;;  %1984 = vmatprep.subr.bf16.mxu0 %v3596_v0  ;;  %v3663_v63 = vld [vmem:[#allocation8 + $0x20] ss:$8 sps:$4 sm:$0xff]  }
 0x12a   :  { %2025 = vmatprep.subr.bf16.mxu1 %v3599_v1  ;;  %v3705_v0 = vld [vmem:[#allocation8 + $0x140] ss:$8 sps:$4 sm:$0xff]   ;;  %v3668_v1 = vld [vmem:[#allocation8 + $0x14] ss:$8 sps:$4 sm:$0xff]  }
 0x12c   :  { %1985 = vmatpush1.bf16.msra.mxu0 %v3594_v2  ;;  %v3710_v2 = vld [vmem:[#allocation8 + $0x134] ss:$8 sps:$4 sm:$0xff]  }
 0x12d   :  { %2026 = vmatpush1.bf16.msra.mxu1 %v3597_v4  ;;  %1986 = vmatprep.subr.bf16.mxu0 %v3602_v5  ;;  %v3666_v4 = vld [vmem:[#allocation8 + $0x10] ss:$8 sps:$4 sm:$0xff]  }
 0x12e   :  { %2027 = vmatprep.subr.bf16.mxu1 %v3605_v6  ;;  %v3708_v5 = vld [vmem:[#allocation8 + $0x130] ss:$8 sps:$4 sm:$0xff]   ;;  %v3671_v6 = vld [vmem:[#allocation8 + $0x4] ss:$8 sps:$4 sm:$0xff]  }
 0x130   :  { %1987 = vmatpush2.bf16.msra.mxu0 %v3600_v7  ;;  %v3713_v7 = vld [vmem:[#allocation8 + $0x124] ss:$8 sps:$4 sm:$0xff]  }
 0x131   :  { %2028 = vmatpush2.bf16.msra.mxu1 %v3603_v8  ;;  %1988 = vmatprep.subr.bf16.mxu0 %v3608_v9  ;;  %v3669_v8 = vld [vmem:[#allocation8] ss:$8 sps:$4 sm:$0xff]  }
 0x132   :  { %2029 = vmatprep.subr.bf16.mxu1 %v3611_v10  ;;  %v3711_v9 = vld [vmem:[#allocation8 + $0x120] ss:$8 sps:$4 sm:$0xff]   ;;  %v3674_v10 = vld [vmem:[#allocation8 + $0xf4] ss:$8 sps:$4 sm:$0xff]  }
 0x134   :  { %1989 = vmatpush2.bf16.msra.mxu0 %v3606_v11  ;;  %v3716_v11 = vld [vmem:[#allocation8 + $0x114] ss:$8 sps:$4 sm:$0xff]  }
 0x135   :  { %2030 = vmatpush2.bf16.msra.mxu1 %v3609_v12  ;;  %1990 = vmatprep.subr.bf16.mxu0 %v3614_v13  ;;  %v3672_v12 = vld [vmem:[#allocation8 + $0xf0] ss:$8 sps:$4 sm:$0xff]  }
 0x136   :  { %2031 = vmatprep.subr.bf16.mxu1 %v3617_v14  ;;  %v3714_v13 = vld [vmem:[#allocation8 + $0x110] ss:$8 sps:$4 sm:$0xff]   ;;  %v3677_v14 = vld [vmem:[#allocation8 + $0xe4] ss:$8 sps:$4 sm:$0xff]  }
 0x138   :  { %1991 = vmatpush2.bf16.msra.mxu0 %v3612_v15  ;;  %v3719_v15 = vld [vmem:[#allocation8 + $0x104] ss:$8 sps:$4 sm:$0xff]  }
 0x139   :  { %2032 = vmatpush2.bf16.msra.mxu1 %v3615_v18  ;;  %1992 = vmatprep.subr.bf16.mxu0 %v3620_v19  ;;  %v3675_v18 = vld [vmem:[#allocation8 + $0xe0] ss:$8 sps:$4 sm:$0xff]  }
 0x13a   :  { %2033 = vmatprep.subr.bf16.mxu1 %v3623_v20  ;;  %v3717_v19 = vld [vmem:[#allocation8 + $0x100] ss:$8 sps:$4 sm:$0xff]   ;;  %v3680_v20 = vld [vmem:[#allocation8 + $0xd4] ss:$8 sps:$4 sm:$0xff]  }
 0x13c   :  { %1993 = vmatpush2.bf16.msra.mxu0 %v3618_v21  ;;  %v3722_v21 = vld [vmem:[#allocation8 + $0x1f4] ss:$8 sps:$4 sm:$0xff]  }
 0x13d   :  { %2034 = vmatpush2.bf16.msra.mxu1 %v3621_v22  ;;  %1994 = vmatprep.subr.bf16.mxu0 %v3626_v23  ;;  %v3678_v22 = vld [vmem:[#allocation8 + $0xd0] ss:$8 sps:$4 sm:$0xff]  }
 0x13e   :  { %2035 = vmatprep.subr.bf16.mxu1 %v3629_v24  ;;  %v3720_v23 = vld [vmem:[#allocation8 + $0x1f0] ss:$8 sps:$4 sm:$0xff]   ;;  %v3683_v24 = vld [vmem:[#allocation8 + $0xc4] ss:$8 sps:$4 sm:$0xff]  }
 0x140   :  { %1995 = vmatpush2.bf16.msra.mxu0 %v3624_v25  ;;  %v3725_v25 = vld [vmem:[#allocation8 + $0x1e4] ss:$8 sps:$4 sm:$0xff]  }
 0x141   :  { %2036 = vmatpush2.bf16.msra.mxu1 %v3627_v26  ;;  %1996 = vmatprep.subr.bf16.mxu0 %v3632_v27  ;;  %v3681_v26 = vld [vmem:[#allocation8 + $0xc0] ss:$8 sps:$4 sm:$0xff]  }
 0x142   :  { %2037 = vmatprep.subr.bf16.mxu1 %v3635_v28  ;;  %v3723_v27 = vld [vmem:[#allocation8 + $0x1e0] ss:$8 sps:$4 sm:$0xff]   ;;  %v3686_v28 = vld [vmem:[#allocation8 + $0xb4] ss:$8 sps:$4 sm:$0xff]  }
 0x144   :  { %1997 = vmatpush2.bf16.msra.mxu0 %v3630_v29  ;;  %v3728_v29 = vld [vmem:[#allocation8 + $0x1d4] ss:$8 sps:$4 sm:$0xff]  }
 0x145   :  { %2038 = vmatpush2.bf16.msra.mxu1 %v3633_v30  ;;  %1998 = vmatprep.subr.bf16.mxu0 %v3638_v33  ;;  %v3684_v30 = vld [vmem:[#allocation8 + $0xb0] ss:$8 sps:$4 sm:$0xff]  }
 0x146   :  { %2039 = vmatprep.subr.bf16.mxu1 %v3641_v34  ;;  %v3726_v33 = vld [vmem:[#allocation8 + $0x1d0] ss:$8 sps:$4 sm:$0xff]   ;;  %v3689_v34 = vld [vmem:[#allocation8 + $0xa4] ss:$8 sps:$4 sm:$0xff]  }
 0x148   :  { %1999 = vmatpush2.bf16.msra.mxu0 %v3636_v35  ;;  %v3731_v35 = vld [vmem:[#allocation8 + $0x1c4] ss:$8 sps:$4 sm:$0xff]  }
 0x149   :  { %2040 = vmatpush2.bf16.msra.mxu1 %v3639_v36  ;;  %2000 = vmatprep.subr.bf16.mxu0 %v3644_v37  ;;  %v3687_v36 = vld [vmem:[#allocation8 + $0xa0] ss:$8 sps:$4 sm:$0xff]  }
 0x14a   :  { %2041 = vmatprep.subr.bf16.mxu1 %v3647_v38  ;;  %v3729_v37 = vld [vmem:[#allocation8 + $0x1c0] ss:$8 sps:$4 sm:$0xff]   ;;  %v3692_v38 = vld [vmem:[#allocation8 + $0x94] ss:$8 sps:$4 sm:$0xff]  }
 0x14c   :  { %2001 = vmatpush2.bf16.msra.mxu0 %v3642_v39  ;;  %v3734_v39 = vld [vmem:[#allocation8 + $0x1b4] ss:$8 sps:$4 sm:$0xff]  }
 0x14d   :  { %2042 = vmatpush2.bf16.msra.mxu1 %v3645_v40  ;;  %2456 = vmatprep.subr.bf16.mxu0 %v3650_v41  ;;  %v426_v40 = vsub.s32 0, %v4002_v43  ;;  %v4064_v41 = vld [vmem:[#allocation7] sm:$0xf] }
 0x14f   :  { %v4053_v45 = vpop.f32.mrf.mxu0  ;;  %2003 = vmatmul.mubr.bf16.vlgmr.msra.gmra.mxu0 %v4039_v31  ;;  %v3698_v31 = vld [vmem:[#allocation8 + $0x174] ss:$8 sps:$4 sm:$0xff]  }
 0x150   :  { %v4055_v46 = vpop.f32.mrf.mxu1  ;;  %2044 = vmatmul.mubr.bf16.vlgmr.msra.gmra.mxu1 %v4043_v32  ;;  %2457 = vmatpush1.bf16.msra.mxu0 %v3648_v42  ;;  %v3657_v32 = vld [vmem:[#allocation8 + $0x40] ss:$8 sps:$4 sm:$0xff]   ;;  %v430_v42 = vsub.s32 1, %v4002_v43 }
 0x151   :  { %v4059_v48 = vpop.f32.mrf.mxu0  ;;  %2458 = vmatprep.subr.bf16.mxu0 %v3653_v44  ;;  %2497 = vmatprep.subr.bf16.mxu1 %v3698_v31  ;;  %v3690_v44 = vld [vmem:[#allocation8 + $0x90] ss:$8 sps:$4 sm:$0xff]   ;;  %v3735_v31 = vld [vmem:[#allocation8 + $0x1a0] ss:$8 sps:$4 sm:$0xff]  }
 0x152   :  { %v4061_v50 = vpop.f32.mrf.mxu1  ;;  %2498 = vmatpush1.bf16.msra.mxu1 %v3696_v55 }
 0x153   :  { %v1762_v3 = vpop.f32.mrf.mxu0  ;;  %2499 = vmatprep.subr.bf16.mxu1 %v3701_v56 }
 0x154   :  { %v1803_v16 = vpop.f32.mrf.mxu1  ;;  %2459 = vmatpush1.bf16.msra.mxu0 %v3651_v47  ;;  %v3732_v47 = vld [vmem:[#allocation8 + $0x1b0] ss:$8 sps:$4 sm:$0xff]   ;;  %v427_v3 = vrot.slane %v4064_v41, %v426_v40 }
 0x155   :  { %v1763_v17 = vpop.f32.mrf.mxu0  ;;  %2460 = vmatprep.subr.bf16.mxu0 %v3656_v62  ;;  %v3695_v62 = vld [vmem:[#allocation8 + $0x84] ss:$8 sps:$4 sm:$0xff]   ;;  %v431_v16 = vrot.slane %v4064_v41, %v430_v42 }
 0x156   :  { %v1804_v52 = vpop.f32.mrf.mxu1  ;;  %2500 = vmatpush1.bf16.msra.mxu1 %v3699_v58  ;;  %v1759_v17 = vadd.f32 %v4053_v45, %v427_v3  ;;  %v3738_v45 = vld [vmem:[#allocation8 + $0x190] ss:$8 sps:$4 sm:$0xff]  }
 0x157   :  { %2501 = vmatprep.subr.bf16.mxu1 %v3704_v57  ;;  %v1761_v52 = vadd.f32 %v4059_v48, %v431_v16 }
 0x158   :  { %2461 = vmatpush1.bf16.msra.mxu0 %v3654_v51  ;;  %v3693_v51 = vld [vmem:[#allocation8 + $0x80] ss:$8 sps:$4 sm:$0xff]   ;;  %v1800_v55 = vadd.f32 %v4055_v46, %v1759_v17 }
 0x159   :  { %2462 = vmatprep.subr.bf16.mxu0 %v3659_v54  ;;  %v3737_v54 = vld [vmem:[#allocation8 + $0x1a4] ss:$8 sps:$4 sm:$0xff]   ;;  %v1802_v58 = vadd.f32 %v4061_v50, %v1761_v52 }
 0x15a   :  { %2502 = vmatpush1.bf16.msra.mxu1 %v3702_v59  ;;  %v3740_v59 = vld [vmem:[#allocation8 + $0x194] ss:$8 sps:$4 sm:$0xff]  }
 0x15b   :  { %2503 = vmatprep.subr.bf16.mxu1 %v3707_v61 }
 0x15c   :  { %2463 = vmatpush1.bf16.msra.mxu0 %v3657_v32 }
 0x15d   :  { %2464 = vmatprep.subr.bf16.mxu0 %v3662_v53 }
 0x15e   :  { %2504 = vmatpush1.bf16.msra.mxu1 %v3705_v0 }
 0x15f   :  { %2505 = vmatprep.subr.bf16.mxu1 %v3710_v2 }
 0x160   :  { %2465 = vmatpush1.bf16.msra.mxu0 %v3660_v49 }
 0x161   :  { %2466 = vmatprep.subr.bf16.mxu0 %v3665_v60 }
 0x162   :  { %2506 = vmatpush1.bf16.msra.mxu1 %v3708_v5 }
 0x163   :  { %2507 = vmatprep.subr.bf16.mxu1 %v3713_v7 }
 0x164   :  { %2467 = vmatpush1.bf16.msra.mxu0 %v3663_v63 }
 0x165   :  { %2468 = vmatprep.subr.bf16.mxu0 %v3668_v1 }
 0x166   :  { %2508 = vmatpush1.bf16.msra.mxu1 %v3711_v9 }
 0x167   :  { %2509 = vmatprep.subr.bf16.mxu1 %v3716_v11 }
 0x168   :  { %2469 = vmatpush1.bf16.msra.mxu0 %v3666_v4  ;;  %v3743_v4 = vld [vmem:[#allocation8 + $0x184] ss:$8 sps:$4 sm:$0xff]  }
 0x169   :  { %2470 = vmatprep.subr.bf16.mxu0 %v3671_v6  ;;  %v3741_v6 = vld [vmem:[#allocation8 + $0x180] ss:$8 sps:$4 sm:$0xff]  }
 0x16a   :  { %2510 = vmatpush1.bf16.msra.mxu1 %v3714_v13 }
 0x16b   :  { %2511 = vmatprep.subr.bf16.mxu1 %v3719_v15 }
 0x16c   :  { %2471 = vmatpush1.bf16.msra.mxu0 %v3669_v8 }
 0x16d   :  { %2472 = vmatprep.subr.bf16.mxu0 %v3674_v10 }
 0x16e   :  { %2512 = vmatpush1.bf16.msra.mxu1 %v3717_v19  ;;  %v3745_v19 = vld [vmem:[#allocation10 + $0x38] sm:$0xff]  }
 0x16f   :  { %2513 = vmatprep.subr.bf16.mxu1 %v3722_v21  ;;  %v3747_v21 = vld [vmem:[#allocation10 + $0x30] sm:$0xff]  }
 0x170   :  { %2473 = vmatpush2.bf16.msra.mxu0 %v3672_v12 }
 0x171   :  { %2474 = vmatprep.subr.bf16.mxu0 %v3677_v14 }
 0x172   :  { %2514 = vmatpush2.bf16.msra.mxu1 %v3720_v23  ;;  %v3749_v23 = vld [vmem:[#allocation10 + $0x28] sm:$0xff]  }
 0x173   :  { %2515 = vmatprep.subr.bf16.mxu1 %v3725_v25  ;;  %v3751_v25 = vld [vmem:[#allocation10 + $0x20] sm:$0xff]  }
 0x174   :  { %2475 = vmatpush2.bf16.msra.mxu0 %v3675_v18  ;;  %v3744_v18 = vld [vmem:[#allocation10 + $0x78] sm:$0xff]  }
 0x175   :  { %2476 = vmatprep.subr.bf16.mxu0 %v3680_v20  ;;  %v3746_v20 = vld [vmem:[#allocation10 + $0x70] sm:$0xff]  }
 0x176   :  { %2516 = vmatpush2.bf16.msra.mxu1 %v3723_v27  ;;  %v3753_v27 = vld [vmem:[#allocation10 + $0x18] sm:$0xff]  }
 0x177   :  { %2517 = vmatprep.subr.bf16.mxu1 %v3728_v29  ;;  %v3755_v29 = vld [vmem:[#allocation10 + $0x10] sm:$0xff]  }
 0x178   :  { %2477 = vmatpush2.bf16.msra.mxu0 %v3678_v22  ;;  %v3748_v22 = vld [vmem:[#allocation10 + $0x68] sm:$0xff]  }
 0x179   :  { %2478 = vmatprep.subr.bf16.mxu0 %v3683_v24  ;;  %v3750_v24 = vld [vmem:[#allocation10 + $0x60] sm:$0xff]  }
 0x17a   :  { %2518 = vmatpush2.bf16.msra.mxu1 %v3726_v33  ;;  %v438_v33 = vsub.s32 3, %v4002_v43 }
 0x17b   :  { %2519 = vmatprep.subr.bf16.mxu1 %v3731_v35 }
 0x17c   :  { %2479 = vmatpush2.bf16.msra.mxu0 %v3681_v26  ;;  %v3752_v26 = vld [vmem:[#allocation10 + $0x58] sm:$0xff]   ;;  %v439_v35 = vrot.slane %v4064_v41, %v438_v33  ;;  %v3186_v33 = vld [vmem:[%s4105_s8] ss:$0 sm:$0xff] }
 0x17d   :  { %2480 = vmatprep.subr.bf16.mxu0 %v3686_v28  ;;  %v3754_v28 = vld [vmem:[#allocation10 + $0x50] sm:$0xff]  }
 0x17e   :  { %2520 = vmatpush2.bf16.msra.mxu1 %v3729_v37 }
 0x17f   :  { %2521 = vmatprep.subr.bf16.mxu1 %v3734_v39 }
 0x180   :  { %2481 = vmatpush2.bf16.msra.mxu0 %v3684_v30  ;;  %v434_v30 = vsub.s32 2, %v4002_v43  ;;  %v3767_v43 = vld [vmem:[#allocation11] sm:$0xff]  }
 0x181   :  { %2482 = vmatprep.subr.bf16.mxu0 %v3689_v34 }
 0x182   :  { %2522 = vmatpush2.bf16.msra.mxu1 %v3732_v47  ;;  %v435_v34 = vrot.slane %v4064_v41, %v434_v30 }
 0x183   :  { %2523 = vmatprep.subr.bf16.mxu1 %v3737_v54 }
 0x184   :  { %2483 = vmatpush2.bf16.msra.mxu0 %v3687_v36 }
 0x185   :  { %2484 = vmatprep.subr.bf16.mxu0 %v3692_v38 }
 0x186   :  { %2524 = vmatpush2.bf16.msra.mxu1 %v3735_v31 }
 0x187   :  { %2525 = vmatprep.subr.bf16.mxu1 %v3740_v59  ;;  %v3757_v59 = vld [vmem:[#allocation10 + $0x8] sm:$0xff]  }
 0x188   :  { %2485 = vmatpush2.bf16.msra.mxu0 %v3690_v44 }
 0x189   :  { %2486 = vmatprep.subr.bf16.mxu0 %v3695_v62 }
 0x18a   :  { %2526 = vmatpush2.bf16.msra.mxu1 %v3738_v45  ;;  %v3758_v45 = vld [vmem:[#allocation10 + $0x40] sm:$0xff]  }
 0x18b   :  { %2527 = vmatprep.subr.bf16.mxu1 %v3743_v4  ;;  %v3763_v4 = vld [vmem:[#allocation11 + $0x20] sm:$0xff]  }
 0x18c   :  { %2487 = vmatpush2.bf16.msra.mxu0 %v3693_v51 }
 0x18d   :  { %3195 = vmatprep.subr.bf16.mxu0 %v3744_v18 }
 0x18e   :  { %2528 = vmatpush2.bf16.msra.mxu1 %v3741_v6  ;;  %v2124_v6 = vld [vmem:[%s4101_s4] sm:$0x3] }
 0x18f   :  { %v1840_v56 = vpop.f32.mrf.mxu0 }
 0x190   :  { %v1881_v32 = vpop.f32.mrf.mxu1  ;;  %v1841_v53 = vadd.f32 %v1840_v56, %v1800_v55 }
 0x191   :  { %v1842_v57 = vpop.f32.mrf.mxu0 }
 0x192   :  { %v1883_v49 = vpop.f32.mrf.mxu1  ;;  %v1882_v60 = vadd.f32 %v1881_v32, %v1841_v53  ;;  %v1843_v61 = vadd.f32 %v1842_v57, %v1802_v58 }
 0x193   :  { %v1844_v63 = vpop.f32.mrf.mxu0 }
 0x194   :  { %v1885_v48 = vpop.f32.mrf.mxu1  ;;  %v1884_v0 = vadd.f32 %v1883_v49, %v1843_v61  ;;  %v2052_v46 = vmax.f32 %v1882_v60, 0.0  ;;  %v3756_v49 = vld [vmem:[#allocation10 + $0x48] sm:$0xff]   ;;  %v3759_v63 = vld [vmem:[#allocation10] sm:$0xff]  }
 0x195   :  { %v1845_v1 = vpop.f32.mrf.mxu0 }
 0x196   :  { %v1886_v2 = vpop.f32.mrf.mxu1  ;;  %v2053_v5 = vmax.f32 %v1884_v0, 0.0  ;;  %v2056_v7 = vpack.c.bf16 %v2052_v46, %v2052_v46  ;;  %v3760_v0 = vld [vmem:[#allocation11 + $0x38] sm:$0xff]   ;;  %v3931_v46 = vmov 0.0   ;;  %v3761_v1 = vld [vmem:[#allocation11 + $0x30] sm:$0xff]  }
 0x197   :  { %3226 = vmatprep.subr.bf16.mxu1 %v3931_v46  ;;  %v3762_v2 = vld [vmem:[#allocation11 + $0x28] sm:$0xff]  }
 0x198   :  { %v2057_v50 = vpack.c.bf16 %v2053_v5, %v2053_v5  ;;  %v3764_v5 = vld [vmem:[#allocation11 + $0x18] sm:$0xff]  }
 0x19a   :  { %2488 = vmatprep.mubr.bf16.mxu0 %v2057_v50  ;;  %v2129_v50 = vrot.slane %v2124_v6, %v426_v40  ;;  %v3766_v40 = vld [vmem:[#allocation11 + $0x8] sm:$0xff]  }
 0x19b   :  { %2489 = vmatmul.mubr.bf16.vlgmr.msra.gmra.mxu0 %v2056_v7  ;;  %v2133_v7 = vrot.slane %v2124_v6, %v430_v42 }
 0x19c   :  { %3196 = vmatpush3.bf16.msra.mxu0 %v3745_v19 }
 0x19d   :  { %3197 = vmatprep.subr.bf16.mxu0 %v3746_v20 }
 0x1a0   :  { %3198 = vmatpush3.bf16.msra.mxu0 %v3747_v21 }
 0x1a1   :  { %3199 = vmatprep.subr.bf16.mxu0 %v3748_v22  ;;  %v3765_v22 = vld [vmem:[#allocation11 + $0x10] sm:$0xff]  }
 0x1a4   :  { %3200 = vmatpush3.bf16.msra.mxu0 %v3749_v23  ;;  %v3169_v23 = vld [vmem:[%s4103_s6] ss:$0 sm:$0xff]  ;;  %s3888_s6 = scalar_lea.vmem %s2838_s24, 32 }
 0x1a5   :  { %3201 = vmatprep.subr.bf16.mxu0 %v3750_v24  ;;  %p3889_p2 = scmp.ne.s32.totalorder %s2838_s24, %s3888_s6  ;;  %p3894_p4 = scmp.lt.s32.totalorder %s3888_s6, %s3888_s6 }
 0x1a7   :  { %p3895_p5 = por %p3894_p4, %p3893_p3 }
 0x1a8   :  { %3202 = vmatpush3.bf16.msra.mxu0 %v3751_v25 }
 0x1a9   :  { %3203 = vmatprep.subr.bf16.mxu0 %v3752_v26  ;;  %p3896_p6 = pnand %p3895_p5, %p3889_p2 }
 0x1ac   :  { %3204 = vmatpush3.bf16.msra.mxu0 %v3753_v27 }
 0x1ad   :  { %3205 = vmatprep.subr.bf16.mxu0 %v3754_v28 }
 0x1b0   :  { %3206 = vmatpush3.bf16.msra.mxu0 %v3755_v29 }
 0x1b1   :  { %3207 = vmatprep.subr.bf16.mxu0 %v3756_v49 }
 0x1b4   :  { %3208 = vmatpush3.bf16.msra.mxu0 %v3757_v59 }
 0x1b5   :  { %3209 = vmatprep.subr.bf16.mxu0 %v3758_v45 }
 0x1b8   :  { %3210 = vmatpush3.bf16.msra.mxu0 %v3759_v63 }
 0x1cf   :  { %v1922_v8 = vpop.f32.mrf.mxu0 }
 0x1d0   :  { %v1963_v9 = vpop.f32.mrf.mxu1  ;;  %v1923_v36 = vadd.f32 %v1922_v8, %v435_v34 }
 0x1d1   :  { %v1924_v10 = vpop.f32.mrf.mxu0 }
 0x1d2   :  { %v1965_v11 = vpop.f32.mrf.mxu1  ;;  %v1925_v37 = vadd.f32 %v1924_v10, %v439_v35  ;;  %v1964_v38 = vadd.f32 %v1963_v9, %v1923_v36 }
 0x1d3   :  { %v1926_v12 = vpop.f32.mrf.mxu0 }
 0x1d4   :  { %v1967_v13 = vpop.f32.mrf.mxu1  ;;  %v1966_v47 = vadd.f32 %v1965_v11, %v1925_v37 }
 0x1d5   :  { %v1927_v14 = vpop.f32.mrf.mxu0 }
 0x1d6   :  { %v1968_v15 = vpop.f32.mrf.mxu1 }
 0x20f   :  { %v2004_v39 = vpop.f32.mrf.mxu0 }
 0x210   :  { %v2045_v44 = vpop.f32.mrf.mxu1  ;;  %v2005_v62 = vadd.f32 %v2004_v39, %v1964_v38 }
 0x211   :  { %v2006_v3 = vpop.f32.mrf.mxu0 }
 0x212   :  { %v2047_v16 = vpop.f32.mrf.mxu1  ;;  %v2046_v51 = vadd.f32 %v2045_v44, %v2005_v62  ;;  %v2007_v17 = vadd.f32 %v2006_v3, %v1966_v47 }
 0x213   :  { %v2008_v52 = vpop.f32.mrf.mxu0 }
 0x214   :  { %v2049_v54 = vpop.f32.mrf.mxu1  ;;  %v2048_v55 = vadd.f32 %v2047_v16, %v2007_v17  ;;  %v2054_v31 = vmax.f32 %v2046_v51, 0.0 }
 0x215   :  { %v2009_v56 = vpop.f32.mrf.mxu0 }
 0x216   :  { %v2050_v32 = vpop.f32.mrf.mxu1  ;;  %v2055_v58 = vmax.f32 %v2048_v55, 0.0  ;;  %v2058_v41 = vpack.c.bf16 %v2054_v31, %v2054_v31 }
 0x218   :  { %v2059_v53 = vpack.c.bf16 %v2055_v58, %v2055_v58 }
 0x21a   :  { %2529 = vmatprep.mubr.bf16.mxu1 %v2059_v53 }
 0x21b   :  { %2530 = vmatmul.mubr.bf16.vlgmr.msra.gmra.mxu1 %v2058_v41 }
 0x21c   :  { %3227 = vmatpush3.bf16.msra.mxu1 %v3760_v0  ;;  %3242 = vmatprep.mubr.msk.bf16.mxu1 %vm3932_vm0, %v3931_v46 }
 0x21d   :  { %3228 = vmatprep.subr.bf16.mxu1 %v3931_v46 }
 0x220   :  { %3229 = vmatpush3.bf16.msra.mxu1 %v3761_v1 }
 0x221   :  { %3230 = vmatprep.subr.bf16.mxu1 %v3931_v46 }
 0x224   :  { %3231 = vmatpush3.bf16.msra.mxu1 %v3762_v2 }
 0x225   :  { %3232 = vmatprep.subr.bf16.mxu1 %v3931_v46 }
 0x228   :  { %3233 = vmatpush3.bf16.msra.mxu1 %v3763_v4 }
 0x229   :  { %3234 = vmatprep.subr.bf16.mxu1 %v3931_v46 }
 0x22c   :  { %3235 = vmatpush3.bf16.msra.mxu1 %v3764_v5 }
 0x22d   :  { %3236 = vmatprep.subr.bf16.mxu1 %v3931_v46 }
 0x230   :  { %3237 = vmatpush3.bf16.msra.mxu1 %v3765_v22 }
 0x231   :  { %3238 = vmatprep.subr.bf16.mxu1 %v3931_v46 }
 0x234   :  { %3239 = vmatpush3.bf16.msra.mxu1 %v3766_v40 }
 0x235   :  { %3240 = vmatprep.subr.bf16.mxu1 %v3931_v46 }
 0x238   :  { %3241 = vmatpush3.bf16.msra.mxu1 %v3767_v43 }
 0x25b   :  { %v2490_v57 = vpop.f32.mrf.mxu0 }
 0x25c   :  { %v2491_v8 = vadd.f32 %v2490_v57, %v2129_v50 }
 0x25d   :  { %v2492_v60 = vpop.f32.mrf.mxu0 }
 0x25e   :  { %v2493_v10 = vadd.f32 %v2492_v60, %v2133_v7 }
 0x25f   :  { %v2494_v61 = vpop.f32.mrf.mxu0 }
 0x261   :  { %v2495_v48 = vpop.f32.mrf.mxu0 }
 0x2db   :  { %v2531_v9 = vpop.f32.mrf.mxu1 }
 0x2dc   :  { %v2532_v11 = vadd.f32 %v2531_v9, %v2491_v8 }
 0x2dd   :  { %v2533_v12 = vpop.f32.mrf.mxu1 }
 0x2de   :  { %v2534_v13 = vadd.f32 %v2533_v12, %v2493_v10  ;;  %v2538_v14 = vmax.f32 %v2532_v11, 0.0 }
 0x2df   :  { %v2535_v15 = vpop.f32.mrf.mxu1 }
 0x2e0   :  { %v2539_v18 = vmax.f32 %v2534_v13, 0.0  ;;  %v2540_v21 = vpack.c.bf16 %v2538_v14, %v2538_v14 }
 0x2e1   :  { %v2536_v19 = vpop.f32.mrf.mxu1 }
 0x2e2   :  { %v2541_v20 = vpack.c.bf16 %v2539_v18, %v2539_v18 }
 0x2e4   :  { %2709 = vmatprep.mubr.bf16.mxu0 %v2541_v20 }
 0x2e5   :  { %2710 = vmatmul.mubr.bf16.vlgmr.msra.gmra.mxu0 %v2540_v21 }
 0x3a5   :  { %v3211_v42 = vpop.f32.mrf.mxu0 }
 0x3a7   :  { %v3212_v24 = vpop.f32.mrf.mxu0 }
 0x3a8   :  { %v3213_v25 = vadd.f32 %v3212_v24, %v3211_v42 }
 0x3a9   :  { %v3214_v26 = vpop.f32.mrf.mxu0 }
 0x3aa   :  { %v2712_v27 = vadd.f32 %v3213_v25, %v3169_v23 }
 0x3ab   :  { %v3215_v28 = vpop.f32.mrf.mxu0 }
 0x3ac   :  { %v2717_v29 = vmax.f32 %v2712_v27, 0.0 }
 0x3ae   :  { %v2718_v30 = vpack.c.bf16 %v2717_v29, %v2717_v29 }
 0x3b0   :  { %3243 = vmatmul.mubr.bf16.vlgmr.msra.gmra.mxu1 %v2718_v30 }
 0x470   :  { %v2824_v34 = vpop.f32.mrf.mxu1 }
 0x471   :  { %v2825_v35 = vadd.f32 %v3186_v33, %v2824_v34 }
 0x472   :  { %v3244_v36 = vpop.f32.mrf.mxu1 }
 0x473   :  { %2830 = vst [vmem:[#allocation13] sm:$0x3] %v2825_v35 }
 0x474   :  { %v2827_v37 = vpop.f32.mrf.mxu1 }
 0x475   :  { %3899 = shalt.err (!%p3896_p6)
}
 0x476   :  { %2840 = dma.vmem_to_hbm [thread:$0]  %s2838_s24, 32, %s4106_s9, [#allocation4]   ;;  %v3245_v38 = vpop.f32.mrf.mxu1 }
 0x477   :  { %3916 = dma.done.wait [#allocation4], 32  }
 0x478   :  { %3917 = vsyncadd [#allocation4], 4294967264 }
 0x479   :  { %2844 = vsyncpa [#allocation3], 1 }
 0x47a   :  { %2845 = vsyncpa [#allocation6], 1 }
 0x47b   :  { %2846 = vsyncpa [#allocation9], 1 }
 0x47c   :  { %2847 = vsyncpa [#allocation12], 1 }
 0x47d   :  { %2848 = vsyncpa [#allocation4], 1 }

</bundles_post_ra>
